<compile_context>
chip_gen: v6e
topology: v6e:2x2x1
jax: 0.10.0
libtpu: 0.0.40
codegen_flags: <defaults>
</compile_context>

<pallas_src>
import functools

import jax
import jax.numpy as jnp
from jax.experimental import pallas as pl
from jax.experimental.pallas import tpu as pltpu


def _head_kernel(pooled_ref, wfc_ref, bfc_ref, wcls_ref, bcls_ref,
                 logits_ref, l_ref, *, tk):
    # pooled_ref: (Bp, C)    bf16   pooled features, fully resident
    # wfc_ref:    (tk, F)    bf16   resnet.fc weight K-tile (transposed vs torch)
    # bfc_ref:    (1, F)     f32
    # wcls_ref:   (F, NCP)   bf16   classifier weight, lane-padded to NCP
    # bcls_ref:   (1, NCP)   f32
    # logits_ref: (Bp, NCP)  f32    lane-dense logits slab
    # l_ref:      (Bp, F)    f32    pre-ReLU embedding (doubles as K accumulator)
    k = pl.program_id(0)

    @pl.when(k == 0)
    def _init():
        l_ref[...] = jnp.zeros_like(l_ref)

    # Partial contraction over this K-tile: bf16 x bf16 -> f32 on the MXU.
    x = pooled_ref[:, pl.ds(pl.multiple_of(k * tk, tk), tk)]
    l_ref[...] += jnp.dot(x, wfc_ref[...], preferred_element_type=jnp.float32)

    @pl.when(k == pl.num_programs(0) - 1)
    def _finalize():
        l = l_ref[...] + bfc_ref[...]                  # f32 bias add (VPU in f32)
        l_ref[...] = l
        h = jnp.maximum(l, 0.0).astype(jnp.bfloat16)   # bf16 only for the MXU dot
        logits = jnp.dot(h, wcls_ref[...],
                         preferred_element_type=jnp.float32) + bcls_ref[...]
        logits_ref[...] = logits.astype(logits_ref.dtype)


@functools.partial(jax.jit, static_argnames=("tk",))
def custom_network_metric_head(feat_nchw, w_fc, b_fc, w_cls, b_cls, *, tk=None):
    """Pallas head: avgpool -> fc -> (ReLU -> classifier).  Returns (logits, l)."""
    B, C, H, W = feat_nchw.shape
    F = w_fc.shape[1]
    NC = w_cls.shape[1]
    NCP = ((NC + 127) // 128) * 128        # lane-dense logits width
    Bp = ((B + 7) // 8) * 8                # sublane-aligned batch

    if tk is None:
        tk = C                             # full-K tile: grid of 1 (review item)
    assert C % tk == 0, "channel count must be divisible by the K tile"
    nk = C // tk

    # Global average pool directly on NCHW in XLA (no transpose HBM pass);
    # only the tiny (Bp, C) pooled tensor enters the kernel, cast to bf16.
    pooled = jnp.mean(feat_nchw, axis=(2, 3)).astype(jnp.bfloat16)   # (B, C)
    pooled_p = jnp.zeros((Bp, C), jnp.bfloat16).at[:B].set(pooled)   # (Bp, C)

    wfc_bf = w_fc.astype(jnp.bfloat16)                               # (C, F)
    bfc2 = b_fc.reshape(1, F).astype(jnp.float32)
    wcls_bf = jnp.zeros((F, NCP), jnp.bfloat16).at[:, :NC].set(
        w_cls.astype(jnp.bfloat16))
    bcls2 = jnp.zeros((1, NCP), jnp.float32).at[:, :NC].set(
        b_cls.reshape(1, NC).astype(jnp.float32))

    bytes_accessed = (pooled_p.size * 2 + wfc_bf.size * 2 + bfc2.size * 4
                      + wcls_bf.size * 2 + bcls2.size * 4
                      + Bp * NCP * 4 + Bp * F * 4)
    cost = pl.CostEstimate(
        flops=2 * Bp * C * F + 2 * Bp * F * NCP,
        transcendentals=0,
        bytes_accessed=bytes_accessed)

    grid_spec = pltpu.PrefetchScalarGridSpec(
        num_scalar_prefetch=0,
        grid=(nk,),                                       # stream w_fc over K
        in_specs=[
            pl.BlockSpec((Bp, C), lambda k: (0, 0)),      # pooled (resident)
            pl.BlockSpec((tk, F), lambda k: (k, 0)),      # w_fc K-tile
            pl.BlockSpec((1, F), lambda k: (0, 0)),       # b_fc (resident)
            pl.BlockSpec((F, NCP), lambda k: (0, 0)),     # w_cls (resident)
            pl.BlockSpec((1, NCP), lambda k: (0, 0)),     # b_cls (resident)
        ],
        out_specs=[
            pl.BlockSpec((Bp, NCP), lambda k: (0, 0)),    # logits (lane-dense)
            pl.BlockSpec((Bp, F), lambda k: (0, 0)),      # l (accumulator)
        ],
    )

    # TODO(synk): for v7x at realistic batch, add a leading "parallel" batch
    # grid axis (before the K axis, with updated output index_maps) to use both
    # TensorCores; not worth it at B=2.
    logits_p, l_p = pl.pallas_call(
        functools.partial(_head_kernel, tk=tk),
        out_shape=(jax.ShapeDtypeStruct((Bp, NCP), jnp.float32),
                   jax.ShapeDtypeStruct((Bp, F), jnp.float32)),
        grid_spec=grid_spec,
        compiler_params=pltpu.CompilerParams(
            dimension_semantics=("arbitrary",)),          # reduction axis
        cost_estimate=cost,
    )(pooled_p, wfc_bf, bfc2, wcls_bf, bcls2)

    return logits_p[:B, :NC], l_p[:B]


def _torch_linear_init(key, fan_in, fan_out):
    """Deterministic init matching torch.nn.Linear defaults: U(-1/sqrt(fan_in), ...)."""
    kw, kb = jax.random.split(key)
    bound = 1.0 / jnp.sqrt(float(fan_in))
    # Stored already transposed, i.e. (fan_in, fan_out), so the kernel does x @ W.
    w = jax.random.uniform(kw, (fan_in, fan_out), jnp.float32, -bound, bound)
    b = jax.random.uniform(kb, (fan_out,), jnp.float32, -bound, bound)
    return w, b


def _reference(feat_nchw, w_fc, b_fc, w_cls, b_cls):
    """Plain-JAX reference using the same bf16 operand quantization as the kernel."""
    pooled = jnp.mean(feat_nchw, axis=(2, 3))                       # (B, C) f32
    pooled_q = pooled.astype(jnp.bfloat16).astype(jnp.float32)
    wfc_q = w_fc.astype(jnp.bfloat16).astype(jnp.float32)
    l = pooled_q @ wfc_q + b_fc
    h_q = jnp.maximum(l, 0.0).astype(jnp.bfloat16).astype(jnp.float32)
    wcls_q = w_cls.astype(jnp.bfloat16).astype(jnp.float32)
    logits = h_q @ wcls_q + b_cls
    return logits, l


if __name__ == "__main__":
    # Small, module-consistent shapes:
    #   backbone feature map: B=2, C=2048 (resnet50.fc.in_features), H=W=4
    #   internal_features=512 (module default), num_classes=10
    B, C, H, W = 2, 2048, 4, 4
    INTERNAL_FEATURES = 512
    NUM_CLASSES = 10

    key = jax.random.PRNGKey(0)
    k_feat, k_fc, k_cls = jax.random.split(key, 3)

    feat = jax.random.normal(k_feat, (B, C, H, W), jnp.float32)
    w_fc, b_fc = _torch_linear_init(k_fc, C, INTERNAL_FEATURES)
    w_cls, b_cls = _torch_linear_init(k_cls, INTERNAL_FEATURES, NUM_CLASSES)

    logits, l = custom_network_metric_head(feat, w_fc, b_fc, w_cls, b_cls)
    jax.block_until_ready((logits, l))

    ref_logits, ref_l = _reference(feat, w_fc, b_fc, w_cls, b_cls)
    assert logits.shape == (B, NUM_CLASSES) and l.shape == (B, INTERNAL_FEATURES)
    # bf16 operand quantization + MXU accumulation-order differences -> 1e-2 tol.
    assert jnp.allclose(logits, ref_logits, atol=1e-2, rtol=1e-2)
    assert jnp.allclose(l, ref_l, atol=1e-2, rtol=1e-2)

    print("KERNEL_OK")
</pallas_src>

<mosaic_0001>
module attributes {stable_mosaic.version = 11 : i64} {
  func.func @_head_kernel(%arg0: i32, %arg1: memref<8x2048xbf16, #tpu.memory_space<vmem>>, %arg2: memref<2048x512xbf16, #tpu.memory_space<vmem>>, %arg3: memref<1x512xf32, #tpu.memory_space<vmem>>, %arg4: memref<512x128xbf16, #tpu.memory_space<vmem>>, %arg5: memref<1x128xf32, #tpu.memory_space<vmem>>, %arg6: memref<8x128xf32, #tpu.memory_space<vmem>>, %arg7: memref<8x512xf32, #tpu.memory_space<vmem>>) attributes {dimension_semantics = [#tpu.dimension_semantics<arbitrary>], iteration_bounds = array<i64: 1>, scalar_prefetch = 0 : i64, scratch_operands = 0 : i64, tpu.core_type = #tpu.core_type<tc>, window_params = [{pipeline_mode = #tpu.pipeline_mode<synchronous>, transform_indices = @transform_0, window_bounds = array<i64: 8, 2048>}, {transform_indices = @transform_1, window_bounds = array<i64: 2048, 512>}, {pipeline_mode = #tpu.pipeline_mode<synchronous>, transform_indices = @transform_2, window_bounds = array<i64: 1, 512>}, {pipeline_mode = #tpu.pipeline_mode<synchronous>, transform_indices = @transform_3, window_bounds = array<i64: 512, 128>}, {pipeline_mode = #tpu.pipeline_mode<synchronous>, transform_indices = @transform_4, window_bounds = array<i64: 1, 128>}, {pipeline_mode = #tpu.pipeline_mode<synchronous>, transform_indices = @transform_5, window_bounds = array<i64: 8, 128>}, {pipeline_mode = #tpu.pipeline_mode<synchronous>, transform_indices = @transform_6, window_bounds = array<i64: 8, 512>}]} {
    %c0_i32 = arith.constant 0 : i32
    %0 = arith.cmpi eq, %arg0, %c0_i32 : i32
    %1 = arith.extui %0 : i1 to i32
    %c0_i32_0 = arith.constant 0 : i32
    %2 = arith.cmpi ne, %1, %c0_i32_0 : i32
    scf.if %2 {
      %cst_9 = arith.constant 0.000000e+00 : f32
      %15 = vector.broadcast %cst_9 : f32 to vector<8x512xf32>
      %c0_10 = arith.constant 0 : index
      %c0_11 = arith.constant 0 : index
      %16 = vector.load %arg7[%c0_10, %c0_11] : memref<8x512xf32, #tpu.memory_space<vmem>>, vector<8x512xf32>
      tpu.vector_store %arg7[%c0_10, %c0_11], %15 {strides = array<i32>} : memref<8x512xf32, #tpu.memory_space<vmem>>, vector<8x512xf32>,
    } else {
    }
    %c2048_i32 = arith.constant 2048 : i32
    %3 = arith.muli %arg0, %c2048_i32 : i32
    %4 = tpu.assume_multiple %3, 2048 : i32
    %c0 = arith.constant 0 : index
    %5 = arith.index_cast %4 : i32 to index
    %6 = vector.load %arg1[%c0, %5] : memref<8x2048xbf16, #tpu.memory_space<vmem>>, vector<8x2048xbf16>
    %c0_1 = arith.constant 0 : index
    %c0_2 = arith.constant 0 : index
    %7 = vector.load %arg7[%c0_1, %c0_2] : memref<8x512xf32, #tpu.memory_space<vmem>>, vector<8x512xf32>
    %c0_3 = arith.constant 0 : index
    %c0_4 = arith.constant 0 : index
    %8 = vector.load %arg2[%c0_3, %c0_4] : memref<2048x512xbf16, #tpu.memory_space<vmem>>, vector<2048x512xbf16>
    %cst = arith.constant dense<0.000000e+00> : vector<8x512xf32>
    %9 = tpu.matmul %6, %8, %cst {dimension_numbers = #tpu.dot_dimension_numbers<[1], [0], [0], [1], [0, 0, 1, 1], [], []>} : vector<8x2048xbf16>, vector<2048x512xbf16>, vector<8x512xf32> -> vector<8x512xf32>
    %10 = arith.addf %7, %9 : vector<8x512xf32>
    %c0_5 = arith.constant 0 : index
    %c0_6 = arith.constant 0 : index
    %11 = vector.load %arg7[%c0_5, %c0_6] : memref<8x512xf32, #tpu.memory_space<vmem>>, vector<8x512xf32>
    tpu.vector_store %arg7[%c0_5, %c0_6], %10 {strides = array<i32>} : memref<8x512xf32, #tpu.memory_space<vmem>>, vector<8x512xf32>,
    %c0_i32_7 = arith.constant 0 : i32
    %12 = arith.cmpi eq, %arg0, %c0_i32_7 : i32
    %13 = arith.extui %12 : i1 to i32
    %c0_i32_8 = arith.constant 0 : i32
    %14 = arith.cmpi ne, %13, %c0_i32_8 : i32
    scf.if %14 {
      %c0_9 = arith.constant 0 : index
      %c0_10 = arith.constant 0 : index
      %15 = vector.load %arg7[%c0_9, %c0_10] : memref<8x512xf32, #tpu.memory_space<vmem>>, vector<8x512xf32>
      %c0_11 = arith.constant 0 : index
      %c0_12 = arith.constant 0 : index
      %16 = vector.load %arg3[%c0_11, %c0_12] : memref<1x512xf32, #tpu.memory_space<vmem>>, vector<1x512xf32>
      %17 = vector.broadcast %16 : vector<1x512xf32> to vector<8x512xf32>
      %18 = arith.addf %15, %17 : vector<8x512xf32>
      %c0_13 = arith.constant 0 : index
      %c0_14 = arith.constant 0 : index
      %19 = vector.load %arg7[%c0_13, %c0_14] : memref<8x512xf32, #tpu.memory_space<vmem>>, vector<8x512xf32>
      tpu.vector_store %arg7[%c0_13, %c0_14], %18 {strides = array<i32>} : memref<8x512xf32, #tpu.memory_space<vmem>>, vector<8x512xf32>,
      %cst_15 = arith.constant 0.000000e+00 : f32
      %20 = vector.broadcast %cst_15 : f32 to vector<8x512xf32>
      %21 = arith.maximumf %18, %20 : vector<8x512xf32>
      %22 = arith.truncf %21 : vector<8x512xf32> to vector<8x512xbf16>
      %c0_16 = arith.constant 0 : index
      %c0_17 = arith.constant 0 : index
      %23 = vector.load %arg4[%c0_16, %c0_17] : memref<512x128xbf16, #tpu.memory_space<vmem>>, vector<512x128xbf16>
      %cst_18 = arith.constant dense<0.000000e+00> : vector<8x128xf32>
      %24 = tpu.matmul %22, %23, %cst_18 {dimension_numbers = #tpu.dot_dimension_numbers<[1], [0], [0], [1], [0, 0, 1, 1], [], []>} : vector<8x512xbf16>, vector<512x128xbf16>, vector<8x128xf32> -> vector<8x128xf32>
      %c0_19 = arith.constant 0 : index
      %c0_20 = arith.constant 0 : index
      %25 = vector.load %arg5[%c0_19, %c0_20] : memref<1x128xf32, #tpu.memory_space<vmem>>, vector<1x128xf32>
      %26 = vector.broadcast %25 : vector<1x128xf32> to vector<8x128xf32>
      %27 = arith.addf %24, %26 : vector<8x128xf32>
      %c0_21 = arith.constant 0 : index
      %c0_22 = arith.constant 0 : index
      %28 = vector.load %arg6[%c0_21, %c0_22] : memref<8x128xf32, #tpu.memory_space<vmem>>, vector<8x128xf32>
      tpu.vector_store %arg6[%c0_21, %c0_22], %27 {strides = array<i32>} : memref<8x128xf32, #tpu.memory_space<vmem>>, vector<8x128xf32>,
    } else {
    }
    return
  }
  func.func @transform_0(%arg0: i32) -> (i32, i32) {
    %c0_i32 = arith.constant 0 : i32
    %c0_i32_0 = arith.constant 0 : i32
    %c0_i32_1 = arith.constant 0 : i32
    return %c0_i32, %c0_i32_0 : i32, i32
  }
  func.func @transform_1(%arg0: i32) -> (i32, i32) {
    %c0_i32 = arith.constant 0 : i32
    %c0_i32_0 = arith.constant 0 : i32
    return %arg0, %c0_i32 : i32, i32
  }
  func.func @transform_2(%arg0: i32) -> (i32, i32) {
    %c0_i32 = arith.constant 0 : i32
    %c0_i32_0 = arith.constant 0 : i32
    %c0_i32_1 = arith.constant 0 : i32
    return %c0_i32, %c0_i32_0 : i32, i32
  }
  func.func @transform_3(%arg0: i32) -> (i32, i32) {
    %c0_i32 = arith.constant 0 : i32
    %c0_i32_0 = arith.constant 0 : i32
    %c0_i32_1 = arith.constant 0 : i32
    return %c0_i32, %c0_i32_0 : i32, i32
  }
  func.func @transform_4(%arg0: i32) -> (i32, i32) {
    %c0_i32 = arith.constant 0 : i32
    %c0_i32_0 = arith.constant 0 : i32
    %c0_i32_1 = arith.constant 0 : i32
    return %c0_i32, %c0_i32_0 : i32, i32
  }
  func.func @transform_5(%arg0: i32) -> (i32, i32) {
    %c0_i32 = arith.constant 0 : i32
    %c0_i32_0 = arith.constant 0 : i32
    %c0_i32_1 = arith.constant 0 : i32
    return %c0_i32, %c0_i32_0 : i32, i32
  }
  func.func @transform_6(%arg0: i32) -> (i32, i32) {
    %c0_i32 = arith.constant 0 : i32
    %c0_i32_0 = arith.constant 0 : i32
    %c0_i32_1 = arith.constant 0 : i32
    return %c0_i32, %c0_i32_0 : i32, i32
  }
}

</mosaic_0001>

<bundles_post_ra>
// kernel: custom_network_metric_head.1
= control target key start
LH: loop header
LB: loop body
LE: loop exit
PB: predicated region body
PF: predicated region fallthrough
CT: control target
= control target key end

     0   :  { %s7517_s1 = inlined_call_operand.vmem [shape: bf16[2048,512], index: 1, kind: input, shape index: {}]   ;;  %s7518_s0 = inlined_call_operand.vmem [shape: bf16[8,2048], index: 0, kind: input, shape index: {}]   ;;  %s7519_s3 = inlined_call_operand.vmem [shape: bf16[512,128], index: 3, kind: input, shape index: {}]   ;;  %s7520_s2 = inlined_call_operand.vmem [shape: f32[1,512], index: 2, kind: input, shape index: {}]   ;;  %s7521_s6 = inlined_call_operand.vmem [shape: f32[8,512], index: 6, kind: output, shape index: {1}]   ;;  %s7522_s4 = inlined_call_operand.vmem [shape: f32[1,128], index: 4, kind: input, shape index: {}]   ;;  %s7523_s5 = inlined_call_operand.vmem [shape: f32[8,128], index: 5, kind: output, shape index: {0}]  }
   0x1   :  { %v4845_v0 = vld [vmem:[%s7517_s1 + $0xe4] ss:$16 sps:$4 sm:$0xff]   ;;  %v4849_v2 = vld [vmem:[%s7517_s1 + $0xe0] ss:$16 sps:$4 sm:$0xff]   ;;  %v37_v48 = vld [vmem:[%s7518_s0 + $0x8] sm:$0xff] }
   0x2   :  { %v4847_v1 = vld [vmem:[%s7517_s1 + $0x2e4] ss:$16 sps:$4 sm:$0xff]   ;;  %3176 = vmatprep.subr.bf16.mxu0 %v4845_v0  ;;  %v4850_v3 = vld [vmem:[%s7517_s1 + $0x2e0] ss:$16 sps:$4 sm:$0xff]   ;;  %v5848_v51 = vcombine.high %v37_v48, %v37_v48 }
   0x3   :  { %3217 = vmatprep.subr.bf16.mxu1 %v4847_v1  ;;  %v4851_v4 = vld [vmem:[%s7517_s1 + $0xc4] ss:$16 sps:$4 sm:$0xff]   ;;  %3177 = vmatpush1.bf16.msra.mxu0 %v4849_v2  ;;  %v4855_v6 = vld [vmem:[%s7517_s1 + $0xc0] ss:$16 sps:$4 sm:$0xff]  }
   0x4   :  { %3218 = vmatpush1.bf16.msra.mxu1 %v4850_v3  ;;  %v4853_v5 = vld [vmem:[%s7517_s1 + $0x2c4] ss:$16 sps:$4 sm:$0xff]   ;;  %3178 = vmatprep.subr.bf16.mxu0 %v4851_v4  ;;  %v4856_v7 = vld [vmem:[%s7517_s1 + $0x2c0] ss:$16 sps:$4 sm:$0xff]  }
   0x5   :  { %3219 = vmatprep.subr.bf16.mxu1 %v4853_v5  ;;  %v4857_v8 = vld [vmem:[%s7517_s1 + $0xa4] ss:$16 sps:$4 sm:$0xff]   ;;  %v4861_v10 = vld [vmem:[%s7517_s1 + $0xa0] ss:$16 sps:$4 sm:$0xff]   ;;  %3249 = vmatprep.mubr.bf16.mxu1 %v5848_v51 }
   0x6   :  { %v4859_v9 = vld [vmem:[%s7517_s1 + $0x2a4] ss:$16 sps:$4 sm:$0xff]   ;;  %v4862_v11 = vld [vmem:[%s7517_s1 + $0x2a0] ss:$16 sps:$4 sm:$0xff]  }
   0x7   :  { %3179 = vmatpush1.bf16.msra.mxu0 %v4855_v6  ;;  %v4863_v12 = vld [vmem:[%s7517_s1 + $0x84] ss:$16 sps:$4 sm:$0xff]   ;;  %v4867_v14 = vld [vmem:[%s7517_s1 + $0x80] ss:$16 sps:$4 sm:$0xff]  }
   0x8   :  { %3220 = vmatpush1.bf16.msra.mxu1 %v4856_v7  ;;  %3180 = vmatprep.subr.bf16.mxu0 %v4857_v8  ;;  %v4865_v13 = vld [vmem:[%s7517_s1 + $0x284] ss:$16 sps:$4 sm:$0xff]   ;;  %v4868_v15 = vld [vmem:[%s7517_s1 + $0x280] ss:$16 sps:$4 sm:$0xff]   ;;  %v5908_v7 = vcombine.low %v37_v48, %v37_v48 }
   0x9   :  { %3221 = vmatprep.subr.bf16.mxu1 %v4859_v9  ;;  %v4869_v16 = vld [vmem:[%s7517_s1 + $0x64] ss:$16 sps:$4 sm:$0xff]   ;;  %v4873_v18 = vld [vmem:[%s7517_s1 + $0x60] ss:$16 sps:$4 sm:$0xff]  }
   0xa   :  { %v4871_v17 = vld [vmem:[%s7517_s1 + $0x264] ss:$16 sps:$4 sm:$0xff]   ;;  %v4874_v19 = vld [vmem:[%s7517_s1 + $0x260] ss:$16 sps:$4 sm:$0xff]  }
   0xb   :  { %3181 = vmatpush1.bf16.msra.mxu0 %v4861_v10  ;;  %v4875_v20 = vld [vmem:[%s7517_s1 + $0x44] ss:$16 sps:$4 sm:$0xff]   ;;  %v4879_v22 = vld [vmem:[%s7517_s1 + $0x40] ss:$16 sps:$4 sm:$0xff]  }
   0xc   :  { %3222 = vmatpush1.bf16.msra.mxu1 %v4862_v11  ;;  %3182 = vmatprep.subr.bf16.mxu0 %v4863_v12  ;;  %v4877_v21 = vld [vmem:[%s7517_s1 + $0x244] ss:$16 sps:$4 sm:$0xff]   ;;  %v4880_v23 = vld [vmem:[%s7517_s1 + $0x240] ss:$16 sps:$4 sm:$0xff]  }
   0xd   :  { %3223 = vmatprep.subr.bf16.mxu1 %v4865_v13  ;;  %v4881_v24 = vld [vmem:[%s7517_s1 + $0x24] ss:$16 sps:$4 sm:$0xff]   ;;  %v4885_v26 = vld [vmem:[%s7517_s1 + $0x20] ss:$16 sps:$4 sm:$0xff]  }
   0xe   :  { %v4883_v25 = vld [vmem:[%s7517_s1 + $0x224] ss:$16 sps:$4 sm:$0xff]   ;;  %v4886_v27 = vld [vmem:[%s7517_s1 + $0x220] ss:$16 sps:$4 sm:$0xff]  }
   0xf   :  { %3183 = vmatpush1.bf16.msra.mxu0 %v4867_v14  ;;  %v4887_v28 = vld [vmem:[%s7517_s1 + $0x4] ss:$16 sps:$4 sm:$0xff]   ;;  %v4891_v30 = vld [vmem:[%s7517_s1] ss:$16 sps:$4 sm:$0xff]  }
  0x10   :  { %3224 = vmatpush1.bf16.msra.mxu1 %v4868_v15  ;;  %3184 = vmatprep.subr.bf16.mxu0 %v4869_v16  ;;  %v4889_v29 = vld [vmem:[%s7517_s1 + $0x204] ss:$16 sps:$4 sm:$0xff]   ;;  %v4892_v31 = vld [vmem:[%s7517_s1 + $0x200] ss:$16 sps:$4 sm:$0xff]  }
  0x11   :  { %3225 = vmatprep.subr.bf16.mxu1 %v4871_v17  ;;  %v4893_v32 = vld [vmem:[%s7517_s1 + $0x1e4] ss:$16 sps:$4 sm:$0xff]   ;;  %v4897_v34 = vld [vmem:[%s7517_s1 + $0x1e0] ss:$16 sps:$4 sm:$0xff]  }
  0x12   :  { %v4895_v33 = vld [vmem:[%s7517_s1 + $0x3e4] ss:$16 sps:$4 sm:$0xff]   ;;  %v4898_v35 = vld [vmem:[%s7517_s1 + $0x3e0] ss:$16 sps:$4 sm:$0xff]  }
  0x13   :  { %3185 = vmatpush1.bf16.msra.mxu0 %v4873_v18  ;;  %v4899_v36 = vld [vmem:[%s7517_s1 + $0x1c4] ss:$16 sps:$4 sm:$0xff]   ;;  %v4903_v38 = vld [vmem:[%s7517_s1 + $0x1c0] ss:$16 sps:$4 sm:$0xff]  }
  0x14   :  { %3226 = vmatpush1.bf16.msra.mxu1 %v4874_v19  ;;  %3186 = vmatprep.subr.bf16.mxu0 %v4875_v20  ;;  %v4901_v37 = vld [vmem:[%s7517_s1 + $0x3c4] ss:$16 sps:$4 sm:$0xff]   ;;  %v4904_v39 = vld [vmem:[%s7517_s1 + $0x3c0] ss:$16 sps:$4 sm:$0xff]  }
  0x15   :  { %3227 = vmatprep.subr.bf16.mxu1 %v4877_v21  ;;  %v4905_v40 = vld [vmem:[%s7517_s1 + $0x1a4] ss:$16 sps:$4 sm:$0xff]   ;;  %v4909_v42 = vld [vmem:[%s7517_s1 + $0x1a0] ss:$16 sps:$4 sm:$0xff]  }
  0x16   :  { %v4907_v41 = vld [vmem:[%s7517_s1 + $0x3a4] ss:$16 sps:$4 sm:$0xff]   ;;  %v4910_v43 = vld [vmem:[%s7517_s1 + $0x3a0] ss:$16 sps:$4 sm:$0xff]  }
  0x17   :  { %3187 = vmatpush1.bf16.msra.mxu0 %v4879_v22  ;;  %v4911_v44 = vld [vmem:[%s7517_s1 + $0x184] ss:$16 sps:$4 sm:$0xff]   ;;  %v4915_v49 = vld [vmem:[%s7517_s1 + $0x180] ss:$16 sps:$4 sm:$0xff]  }
  0x18   :  { %3228 = vmatpush1.bf16.msra.mxu1 %v4880_v23  ;;  %3188 = vmatprep.subr.bf16.mxu0 %v4881_v24  ;;  %v4913_v45 = vld [vmem:[%s7517_s1 + $0x384] ss:$16 sps:$4 sm:$0xff]   ;;  %v4916_v50 = vld [vmem:[%s7517_s1 + $0x380] ss:$16 sps:$4 sm:$0xff]  }
  0x19   :  { %3229 = vmatprep.subr.bf16.mxu1 %v4883_v25  ;;  %v36_v46 = vld [vmem:[%s7518_s0] sm:$0xff] }
  0x1a   :  { %v5837_v47 = vcombine.high %v36_v46, %v36_v46  ;;  %v4917_v52 = vld [vmem:[%s7517_s1 + $0x164] ss:$16 sps:$4 sm:$0xff]   ;;  %v4921_v54 = vld [vmem:[%s7517_s1 + $0x160] ss:$16 sps:$4 sm:$0xff]   ;;  %v5906_v6 = vcombine.low %v36_v46, %v36_v46 }
  0x1b   :  { %3189 = vmatpush1.bf16.msra.mxu0 %v4885_v26  ;;  %v4919_v53 = vld [vmem:[%s7517_s1 + $0x364] ss:$16 sps:$4 sm:$0xff]   ;;  %v4922_v55 = vld [vmem:[%s7517_s1 + $0x360] ss:$16 sps:$4 sm:$0xff]  }
  0x1c   :  { %3230 = vmatpush1.bf16.msra.mxu1 %v4886_v27  ;;  %3190 = vmatprep.subr.bf16.mxu0 %v4887_v28  ;;  %v4923_v56 = vld [vmem:[%s7517_s1 + $0x144] ss:$16 sps:$4 sm:$0xff]   ;;  %v4927_v58 = vld [vmem:[%s7517_s1 + $0x140] ss:$16 sps:$4 sm:$0xff]  }
  0x1d   :  { %3231 = vmatprep.subr.bf16.mxu1 %v4889_v29  ;;  %3208 = vmatprep.mubr.bf16.mxu0 %v5837_v47  ;;  %v4925_v57 = vld [vmem:[%s7517_s1 + $0x344] ss:$16 sps:$4 sm:$0xff]   ;;  %v4928_v59 = vld [vmem:[%s7517_s1 + $0x340] ss:$16 sps:$4 sm:$0xff]  }
  0x1e   :  { %v4929_v60 = vld [vmem:[%s7517_s1 + $0x124] ss:$16 sps:$4 sm:$0xff]   ;;  %v4933_v62 = vld [vmem:[%s7517_s1 + $0x120] ss:$16 sps:$4 sm:$0xff]  }
  0x1f   :  { %3191 = vmatpush1.bf16.msra.mxu0 %v4891_v30  ;;  %v4931_v61 = vld [vmem:[%s7517_s1 + $0x324] ss:$16 sps:$4 sm:$0xff]   ;;  %v4934_v63 = vld [vmem:[%s7517_s1 + $0x320] ss:$16 sps:$4 sm:$0xff]  }
  0x20   :  { %3232 = vmatpush1.bf16.msra.mxu1 %v4892_v31  ;;  %3192 = vmatprep.subr.bf16.mxu0 %v4893_v32  ;;  %v4935_v0 = vld [vmem:[%s7517_s1 + $0x104] ss:$16 sps:$4 sm:$0xff]   ;;  %v4939_v2 = vld [vmem:[%s7517_s1 + $0x100] ss:$16 sps:$4 sm:$0xff]  }
  0x21   :  { %3233 = vmatprep.subr.bf16.mxu1 %v4895_v33  ;;  %v4937_v1 = vld [vmem:[%s7517_s1 + $0x304] ss:$16 sps:$4 sm:$0xff]   ;;  %v4940_v3 = vld [vmem:[%s7517_s1 + $0x300] ss:$16 sps:$4 sm:$0xff]   ;;  %v5992_v33 = vld [vmem:[%s7518_s0 + $0x18] sm:$0xff] }
  0x22   :  { %v4947_v4 = vld [vmem:[%s7517_s1 + $0x4e4] ss:$16 sps:$4 sm:$0xff]   ;;  %v4945_v8 = vld [vmem:[%s7517_s1 + $0x4e0] ss:$16 sps:$4 sm:$0xff]  }
  0x23   :  { %3193 = vmatpush2.bf16.msra.mxu0 %v4897_v34  ;;  %v4950_v5 = vld [vmem:[%s7517_s1 + $0x6e4] ss:$16 sps:$4 sm:$0xff]   ;;  %v4948_v9 = vld [vmem:[%s7517_s1 + $0x6e0] ss:$16 sps:$4 sm:$0xff]  }
  0x24   :  { %3234 = vmatpush2.bf16.msra.mxu1 %v4898_v35  ;;  %3194 = vmatprep.subr.bf16.mxu0 %v4899_v36  ;;  %v4953_v10 = vld [vmem:[%s7517_s1 + $0x4c4] ss:$16 sps:$4 sm:$0xff]   ;;  %v4951_v12 = vld [vmem:[%s7517_s1 + $0x4c0] ss:$16 sps:$4 sm:$0xff]  }
  0x25   :  { %3235 = vmatprep.subr.bf16.mxu1 %v4901_v37  ;;  %v4956_v11 = vld [vmem:[%s7517_s1 + $0x6c4] ss:$16 sps:$4 sm:$0xff]   ;;  %v4954_v13 = vld [vmem:[%s7517_s1 + $0x6c0] ss:$16 sps:$4 sm:$0xff]   ;;  %v6006_v37 = vcombine.high %v5992_v33, %v5992_v33 }
  0x26   :  { %v4959_v14 = vld [vmem:[%s7517_s1 + $0x4a4] ss:$16 sps:$4 sm:$0xff]   ;;  %v4957_v16 = vld [vmem:[%s7517_s1 + $0x4a0] ss:$16 sps:$4 sm:$0xff]  }
  0x27   :  { %3195 = vmatpush2.bf16.msra.mxu0 %v4903_v38  ;;  %v4962_v15 = vld [vmem:[%s7517_s1 + $0x6a4] ss:$16 sps:$4 sm:$0xff]   ;;  %v4960_v17 = vld [vmem:[%s7517_s1 + $0x6a0] ss:$16 sps:$4 sm:$0xff]  }
  0x28   :  { %3236 = vmatpush2.bf16.msra.mxu1 %v4904_v39  ;;  %3196 = vmatprep.subr.bf16.mxu0 %v4905_v40  ;;  %v4965_v18 = vld [vmem:[%s7517_s1 + $0x484] ss:$16 sps:$4 sm:$0xff]   ;;  %v4963_v20 = vld [vmem:[%s7517_s1 + $0x480] ss:$16 sps:$4 sm:$0xff]  }
  0x29   :  { %3237 = vmatprep.subr.bf16.mxu1 %v4907_v41  ;;  %v4968_v19 = vld [vmem:[%s7517_s1 + $0x684] ss:$16 sps:$4 sm:$0xff]   ;;  %v4966_v21 = vld [vmem:[%s7517_s1 + $0x680] ss:$16 sps:$4 sm:$0xff]  }
  0x2a   :  { %v4971_v22 = vld [vmem:[%s7517_s1 + $0x464] ss:$16 sps:$4 sm:$0xff]   ;;  %v4969_v24 = vld [vmem:[%s7517_s1 + $0x460] ss:$16 sps:$4 sm:$0xff]  }
  0x2b   :  { %3197 = vmatpush2.bf16.msra.mxu0 %v4909_v42  ;;  %v4974_v23 = vld [vmem:[%s7517_s1 + $0x664] ss:$16 sps:$4 sm:$0xff]   ;;  %v4972_v25 = vld [vmem:[%s7517_s1 + $0x660] ss:$16 sps:$4 sm:$0xff]  }
  0x2c   :  { %3238 = vmatpush2.bf16.msra.mxu1 %v4910_v43  ;;  %3198 = vmatprep.subr.bf16.mxu0 %v4911_v44  ;;  %v4977_v26 = vld [vmem:[%s7517_s1 + $0x444] ss:$16 sps:$4 sm:$0xff]   ;;  %v4975_v28 = vld [vmem:[%s7517_s1 + $0x440] ss:$16 sps:$4 sm:$0xff]  }
  0x2d   :  { %3239 = vmatprep.subr.bf16.mxu1 %v4913_v45  ;;  %v4980_v27 = vld [vmem:[%s7517_s1 + $0x644] ss:$16 sps:$4 sm:$0xff]   ;;  %v4978_v29 = vld [vmem:[%s7517_s1 + $0x640] ss:$16 sps:$4 sm:$0xff]  }
  0x2e   :  { %v4983_v30 = vld [vmem:[%s7517_s1 + $0x424] ss:$16 sps:$4 sm:$0xff]   ;;  %v4981_v34 = vld [vmem:[%s7517_s1 + $0x420] ss:$16 sps:$4 sm:$0xff]  }
  0x2f   :  { %3199 = vmatpush2.bf16.msra.mxu0 %v4915_v49  ;;  %v4986_v31 = vld [vmem:[%s7517_s1 + $0x624] ss:$16 sps:$4 sm:$0xff]   ;;  %v4984_v35 = vld [vmem:[%s7517_s1 + $0x620] ss:$16 sps:$4 sm:$0xff]  }
  0x30   :  { %3240 = vmatpush2.bf16.msra.mxu1 %v4916_v50  ;;  %3200 = vmatprep.subr.bf16.mxu0 %v4917_v52  ;;  %v5987_v32 = vld [vmem:[%s7518_s0 + $0x10] sm:$0xff] }
  0x31   :  { %3241 = vmatprep.subr.bf16.mxu1 %v4919_v53  ;;  %v6002_v36 = vcombine.high %v5987_v32, %v5987_v32  ;;  %v4989_v38 = vld [vmem:[%s7517_s1 + $0x404] ss:$16 sps:$4 sm:$0xff]   ;;  %v4987_v40 = vld [vmem:[%s7517_s1 + $0x400] ss:$16 sps:$4 sm:$0xff]  }
  0x32   :  { %v4992_v39 = vld [vmem:[%s7517_s1 + $0x604] ss:$16 sps:$4 sm:$0xff]   ;;  %v4990_v41 = vld [vmem:[%s7517_s1 + $0x600] ss:$16 sps:$4 sm:$0xff]  }
  0x33   :  { %3201 = vmatpush2.bf16.msra.mxu0 %v4921_v54  ;;  %v4995_v42 = vld [vmem:[%s7517_s1 + $0x5e4] ss:$16 sps:$4 sm:$0xff]   ;;  %v4993_v44 = vld [vmem:[%s7517_s1 + $0x5e0] ss:$16 sps:$4 sm:$0xff]  }
  0x34   :  { %3242 = vmatpush2.bf16.msra.mxu1 %v4922_v55  ;;  %3202 = vmatprep.subr.bf16.mxu0 %v4923_v56  ;;  %v4998_v43 = vld [vmem:[%s7517_s1 + $0x7e4] ss:$16 sps:$4 sm:$0xff]   ;;  %v4996_v45 = vld [vmem:[%s7517_s1 + $0x7e0] ss:$16 sps:$4 sm:$0xff]  }
  0x35   :  { %3243 = vmatprep.subr.bf16.mxu1 %v4925_v57  ;;  %v5001_v46 = vld [vmem:[%s7517_s1 + $0x5c4] ss:$16 sps:$4 sm:$0xff]   ;;  %v4999_v49 = vld [vmem:[%s7517_s1 + $0x5c0] ss:$16 sps:$4 sm:$0xff]  }
  0x36   :  { %v5004_v48 = vld [vmem:[%s7517_s1 + $0x7c4] ss:$16 sps:$4 sm:$0xff]   ;;  %v5002_v50 = vld [vmem:[%s7517_s1 + $0x7c0] ss:$16 sps:$4 sm:$0xff]  }
  0x37   :  { %3203 = vmatpush2.bf16.msra.mxu0 %v4927_v58  ;;  %v5007_v52 = vld [vmem:[%s7517_s1 + $0x5a4] ss:$16 sps:$4 sm:$0xff]   ;;  %v5005_v54 = vld [vmem:[%s7517_s1 + $0x5a0] ss:$16 sps:$4 sm:$0xff]  }
  0x38   :  { %3244 = vmatpush2.bf16.msra.mxu1 %v4928_v59  ;;  %3204 = vmatprep.subr.bf16.mxu0 %v4929_v60  ;;  %v5010_v53 = vld [vmem:[%s7517_s1 + $0x7a4] ss:$16 sps:$4 sm:$0xff]   ;;  %v5008_v55 = vld [vmem:[%s7517_s1 + $0x7a0] ss:$16 sps:$4 sm:$0xff]  }
  0x39   :  { %3245 = vmatprep.subr.bf16.mxu1 %v4931_v61  ;;  %v5013_v56 = vld [vmem:[%s7517_s1 + $0x584] ss:$16 sps:$4 sm:$0xff]   ;;  %v5011_v58 = vld [vmem:[%s7517_s1 + $0x580] ss:$16 sps:$4 sm:$0xff]  }
  0x3a   :  { %v5016_v57 = vld [vmem:[%s7517_s1 + $0x784] ss:$16 sps:$4 sm:$0xff]   ;;  %v5014_v59 = vld [vmem:[%s7517_s1 + $0x780] ss:$16 sps:$4 sm:$0xff]  }
  0x3b   :  { %3205 = vmatpush2.bf16.msra.mxu0 %v4933_v62  ;;  %v5019_v60 = vld [vmem:[%s7517_s1 + $0x564] ss:$16 sps:$4 sm:$0xff]   ;;  %v5017_v62 = vld [vmem:[%s7517_s1 + $0x560] ss:$16 sps:$4 sm:$0xff]  }
  0x3c   :  { %3246 = vmatpush2.bf16.msra.mxu1 %v4934_v63  ;;  %3206 = vmatprep.subr.bf16.mxu0 %v4935_v0  ;;  %v5022_v61 = vld [vmem:[%s7517_s1 + $0x764] ss:$16 sps:$4 sm:$0xff]   ;;  %v5020_v63 = vld [vmem:[%s7517_s1 + $0x760] ss:$16 sps:$4 sm:$0xff]  }
  0x3d   :  { %3247 = vmatprep.subr.bf16.mxu1 %v4937_v1  ;;  %v5025_v0 = vld [vmem:[%s7517_s1 + $0x544] ss:$16 sps:$4 sm:$0xff]  }
  0x3e   :  { %v5028_v1 = vld [vmem:[%s7517_s1 + $0x744] ss:$16 sps:$4 sm:$0xff]  }
  0x3f   :  { %3207 = vmatpush2.bf16.msra.mxu0 %v4939_v2  ;;  %v5023_v2 = vld [vmem:[%s7517_s1 + $0x540] ss:$16 sps:$4 sm:$0xff]  }
  0x40   :  { %3248 = vmatpush2.bf16.msra.mxu1 %v4940_v3  ;;  %3258 = vmatprep.subr.bf16.mxu0 %v4947_v4  ;;  %v5026_v3 = vld [vmem:[%s7517_s1 + $0x740] ss:$16 sps:$4 sm:$0xff]   ;;  %v5031_v4 = vld [vmem:[%s7517_s1 + $0x524] ss:$16 sps:$4 sm:$0xff]  }
  0x41   :  { %3299 = vmatprep.subr.bf16.mxu1 %v4950_v5  ;;  %v5034_v5 = vld [vmem:[%s7517_s1 + $0x724] ss:$16 sps:$4 sm:$0xff]  }
  0x42   :  { %3209 = vmatmul.mubr.bf16.vlgmr.msra.gmra.mxu0 %v5906_v6 }
  0x43   :  { %3250 = vmatmul.mubr.bf16.vlgmr.msra.gmra.mxu1 %v5908_v7  ;;  %3259 = vmatpush1.bf16.msra.mxu0 %v4945_v8  ;;  %v5029_v8 = vld [vmem:[%s7517_s1 + $0x520] ss:$16 sps:$4 sm:$0xff]  }
  0x44   :  { %3300 = vmatpush1.bf16.msra.mxu1 %v4948_v9  ;;  %3260 = vmatprep.subr.bf16.mxu0 %v4953_v10  ;;  %v5032_v9 = vld [vmem:[%s7517_s1 + $0x720] ss:$16 sps:$4 sm:$0xff]   ;;  %v5037_v10 = vld [vmem:[%s7517_s1 + $0x504] ss:$16 sps:$4 sm:$0xff]  }
  0x45   :  { %3301 = vmatprep.subr.bf16.mxu1 %v4956_v11  ;;  %3290 = vmatprep.mubr.bf16.mxu0 %v6002_v36  ;;  %v5040_v11 = vld [vmem:[%s7517_s1 + $0x704] ss:$16 sps:$4 sm:$0xff]  }
  0x46   :  { %3331 = vmatprep.mubr.bf16.mxu1 %v6006_v37 }
  0x47   :  { %3261 = vmatpush1.bf16.msra.mxu0 %v4951_v12  ;;  %v5035_v12 = vld [vmem:[%s7517_s1 + $0x500] ss:$16 sps:$4 sm:$0xff]  }
  0x48   :  { %3302 = vmatpush1.bf16.msra.mxu1 %v4954_v13  ;;  %3262 = vmatprep.subr.bf16.mxu0 %v4959_v14  ;;  %v5038_v13 = vld [vmem:[%s7517_s1 + $0x700] ss:$16 sps:$4 sm:$0xff]   ;;  %v5047_v14 = vld [vmem:[%s7517_s1 + $0x8e4] ss:$16 sps:$4 sm:$0xff]  }
  0x49   :  { %3303 = vmatprep.subr.bf16.mxu1 %v4962_v15  ;;  %v5050_v15 = vld [vmem:[%s7517_s1 + $0xae4] ss:$16 sps:$4 sm:$0xff]  }
  0x4b   :  { %3263 = vmatpush1.bf16.msra.mxu0 %v4957_v16  ;;  %v6126_v16 = vcombine.low %v5987_v32, %v5987_v32  ;;  %v5065_v32 = vld [vmem:[%s7517_s1 + $0x884] ss:$16 sps:$4 sm:$0xff]  }
  0x4c   :  { %3304 = vmatpush1.bf16.msra.mxu1 %v4960_v17  ;;  %3264 = vmatprep.subr.bf16.mxu0 %v4965_v18  ;;  %v6130_v17 = vcombine.low %v5992_v33, %v5992_v33  ;;  %v5045_v18 = vld [vmem:[%s7517_s1 + $0x8e0] ss:$16 sps:$4 sm:$0xff]   ;;  %v5068_v33 = vld [vmem:[%s7517_s1 + $0xa84] ss:$16 sps:$4 sm:$0xff]  }
  0x4d   :  { %3305 = vmatprep.subr.bf16.mxu1 %v4968_v19  ;;  %v5048_v19 = vld [vmem:[%s7517_s1 + $0xae0] ss:$16 sps:$4 sm:$0xff]  }
  0x4f   :  { %3265 = vmatpush1.bf16.msra.mxu0 %v4963_v20  ;;  %v5053_v20 = vld [vmem:[%s7517_s1 + $0x8c4] ss:$16 sps:$4 sm:$0xff]  }
  0x50   :  { %3306 = vmatpush1.bf16.msra.mxu1 %v4966_v21  ;;  %3266 = vmatprep.subr.bf16.mxu0 %v4971_v22  ;;  %v5056_v21 = vld [vmem:[%s7517_s1 + $0xac4] ss:$16 sps:$4 sm:$0xff]  }
  0x51   :  { %3307 = vmatprep.subr.bf16.mxu1 %v4974_v23  ;;  %v6147_v22 = vld [vmem:[%s7518_s0 + $0x20] sm:$0xff]  ;;  %v6152_v23 = vld [vmem:[%s7518_s0 + $0x28] sm:$0xff] }
  0x53   :  { %3267 = vmatpush1.bf16.msra.mxu0 %v4969_v24  ;;  %v6156_v24 = vcombine.high %v6147_v22, %v6147_v22 }
  0x54   :  { %3308 = vmatpush1.bf16.msra.mxu1 %v4972_v25  ;;  %3268 = vmatprep.subr.bf16.mxu0 %v4977_v26  ;;  %v6160_v25 = vcombine.high %v6152_v23, %v6152_v23  ;;  %v5051_v26 = vld [vmem:[%s7517_s1 + $0x8c0] ss:$16 sps:$4 sm:$0xff]  }
  0x55   :  { %3309 = vmatprep.subr.bf16.mxu1 %v4980_v27  ;;  %v5054_v27 = vld [vmem:[%s7517_s1 + $0xac0] ss:$16 sps:$4 sm:$0xff]  }
  0x57   :  { %3269 = vmatpush1.bf16.msra.mxu0 %v4975_v28  ;;  %v5059_v28 = vld [vmem:[%s7517_s1 + $0x8a4] ss:$16 sps:$4 sm:$0xff]  }
  0x58   :  { %3310 = vmatpush1.bf16.msra.mxu1 %v4978_v29  ;;  %3270 = vmatprep.subr.bf16.mxu0 %v4983_v30  ;;  %v5062_v29 = vld [vmem:[%s7517_s1 + $0xaa4] ss:$16 sps:$4 sm:$0xff]   ;;  %v5057_v30 = vld [vmem:[%s7517_s1 + $0x8a0] ss:$16 sps:$4 sm:$0xff]  }
  0x59   :  { %3311 = vmatprep.subr.bf16.mxu1 %v4986_v31  ;;  %v5060_v31 = vld [vmem:[%s7517_s1 + $0xaa0] ss:$16 sps:$4 sm:$0xff]  }
  0x5b   :  { %3271 = vmatpush1.bf16.msra.mxu0 %v4981_v34  ;;  %v5063_v34 = vld [vmem:[%s7517_s1 + $0x880] ss:$16 sps:$4 sm:$0xff]  }
  0x5c   :  { %3312 = vmatpush1.bf16.msra.mxu1 %v4984_v35  ;;  %3272 = vmatprep.subr.bf16.mxu0 %v4989_v38  ;;  %v5066_v35 = vld [vmem:[%s7517_s1 + $0xa80] ss:$16 sps:$4 sm:$0xff]   ;;  %v5071_v38 = vld [vmem:[%s7517_s1 + $0x864] ss:$16 sps:$4 sm:$0xff]  }
  0x5d   :  { %3313 = vmatprep.subr.bf16.mxu1 %v4992_v39  ;;  %v5074_v39 = vld [vmem:[%s7517_s1 + $0xa64] ss:$16 sps:$4 sm:$0xff]  }
  0x5f   :  { %3273 = vmatpush1.bf16.msra.mxu0 %v4987_v40  ;;  %v5069_v40 = vld [vmem:[%s7517_s1 + $0x860] ss:$16 sps:$4 sm:$0xff]  }
  0x60   :  { %3314 = vmatpush1.bf16.msra.mxu1 %v4990_v41  ;;  %3274 = vmatprep.subr.bf16.mxu0 %v4995_v42  ;;  %v5072_v41 = vld [vmem:[%s7517_s1 + $0xa60] ss:$16 sps:$4 sm:$0xff]   ;;  %v5077_v42 = vld [vmem:[%s7517_s1 + $0x844] ss:$16 sps:$4 sm:$0xff]  }
  0x61   :  { %3315 = vmatprep.subr.bf16.mxu1 %v4998_v43  ;;  %v5080_v43 = vld [vmem:[%s7517_s1 + $0xa44] ss:$16 sps:$4 sm:$0xff]  }
  0x63   :  { %3275 = vmatpush2.bf16.msra.mxu0 %v4993_v44  ;;  %v5075_v44 = vld [vmem:[%s7517_s1 + $0x840] ss:$16 sps:$4 sm:$0xff]  }
  0x64   :  { %3316 = vmatpush2.bf16.msra.mxu1 %v4996_v45  ;;  %3276 = vmatprep.subr.bf16.mxu0 %v5001_v46  ;;  %v5078_v45 = vld [vmem:[%s7517_s1 + $0xa40] ss:$16 sps:$4 sm:$0xff]   ;;  %v5083_v46 = vld [vmem:[%s7517_s1 + $0x824] ss:$16 sps:$4 sm:$0xff]  }
  0x65   :  { %3317 = vmatprep.subr.bf16.mxu1 %v5004_v48  ;;  %v5086_v48 = vld [vmem:[%s7517_s1 + $0xa24] ss:$16 sps:$4 sm:$0xff]  }
  0x67   :  { %3277 = vmatpush2.bf16.msra.mxu0 %v4999_v49  ;;  %v5081_v49 = vld [vmem:[%s7517_s1 + $0x820] ss:$16 sps:$4 sm:$0xff]  }
  0x68   :  { %3318 = vmatpush2.bf16.msra.mxu1 %v5002_v50  ;;  %3278 = vmatprep.subr.bf16.mxu0 %v5007_v52  ;;  %v5084_v50 = vld [vmem:[%s7517_s1 + $0xa20] ss:$16 sps:$4 sm:$0xff]   ;;  %v5089_v52 = vld [vmem:[%s7517_s1 + $0x804] ss:$16 sps:$4 sm:$0xff]  }
  0x69   :  { %3319 = vmatprep.subr.bf16.mxu1 %v5010_v53  ;;  %v5092_v53 = vld [vmem:[%s7517_s1 + $0xa04] ss:$16 sps:$4 sm:$0xff]  }
  0x6b   :  { %3279 = vmatpush2.bf16.msra.mxu0 %v5005_v54  ;;  %v5087_v54 = vld [vmem:[%s7517_s1 + $0x800] ss:$16 sps:$4 sm:$0xff]  }
  0x6c   :  { %3320 = vmatpush2.bf16.msra.mxu1 %v5008_v55  ;;  %3280 = vmatprep.subr.bf16.mxu0 %v5013_v56  ;;  %v5090_v55 = vld [vmem:[%s7517_s1 + $0xa00] ss:$16 sps:$4 sm:$0xff]   ;;  %v5095_v56 = vld [vmem:[%s7517_s1 + $0x9e4] ss:$16 sps:$4 sm:$0xff]  }
  0x6d   :  { %3321 = vmatprep.subr.bf16.mxu1 %v5016_v57  ;;  %v5098_v57 = vld [vmem:[%s7517_s1 + $0xbe4] ss:$16 sps:$4 sm:$0xff]  }
  0x6f   :  { %3281 = vmatpush2.bf16.msra.mxu0 %v5011_v58  ;;  %v5093_v58 = vld [vmem:[%s7517_s1 + $0x9e0] ss:$16 sps:$4 sm:$0xff]  }
  0x70   :  { %3322 = vmatpush2.bf16.msra.mxu1 %v5014_v59  ;;  %3282 = vmatprep.subr.bf16.mxu0 %v5019_v60  ;;  %v5096_v59 = vld [vmem:[%s7517_s1 + $0xbe0] ss:$16 sps:$4 sm:$0xff]   ;;  %v5101_v60 = vld [vmem:[%s7517_s1 + $0x9c4] ss:$16 sps:$4 sm:$0xff]  }
  0x71   :  { %3323 = vmatprep.subr.bf16.mxu1 %v5022_v61  ;;  %v5104_v61 = vld [vmem:[%s7517_s1 + $0xbc4] ss:$16 sps:$4 sm:$0xff]  }
  0x73   :  { %3283 = vmatpush2.bf16.msra.mxu0 %v5017_v62  ;;  %v5099_v62 = vld [vmem:[%s7517_s1 + $0x9c0] ss:$16 sps:$4 sm:$0xff]  }
  0x74   :  { %3324 = vmatpush2.bf16.msra.mxu1 %v5020_v63  ;;  %3284 = vmatprep.subr.bf16.mxu0 %v5025_v0  ;;  %v5102_v63 = vld [vmem:[%s7517_s1 + $0xbc0] ss:$16 sps:$4 sm:$0xff]   ;;  %v5107_v0 = vld [vmem:[%s7517_s1 + $0x9a4] ss:$16 sps:$4 sm:$0xff]  }
  0x75   :  { %3325 = vmatprep.subr.bf16.mxu1 %v5028_v1  ;;  %v5110_v1 = vld [vmem:[%s7517_s1 + $0xba4] ss:$16 sps:$4 sm:$0xff]  }
  0x77   :  { %3285 = vmatpush2.bf16.msra.mxu0 %v5023_v2  ;;  %v5105_v2 = vld [vmem:[%s7517_s1 + $0x9a0] ss:$16 sps:$4 sm:$0xff]  }
  0x78   :  { %3326 = vmatpush2.bf16.msra.mxu1 %v5026_v3  ;;  %3286 = vmatprep.subr.bf16.mxu0 %v5031_v4  ;;  %v5108_v3 = vld [vmem:[%s7517_s1 + $0xba0] ss:$16 sps:$4 sm:$0xff]   ;;  %v5113_v4 = vld [vmem:[%s7517_s1 + $0x984] ss:$16 sps:$4 sm:$0xff]  }
  0x79   :  { %3327 = vmatprep.subr.bf16.mxu1 %v5034_v5  ;;  %v5116_v5 = vld [vmem:[%s7517_s1 + $0xb84] ss:$16 sps:$4 sm:$0xff]  }
  0x7b   :  { %3287 = vmatpush2.bf16.msra.mxu0 %v5029_v8  ;;  %v5111_v8 = vld [vmem:[%s7517_s1 + $0x980] ss:$16 sps:$4 sm:$0xff]  }
  0x7c   :  { %3328 = vmatpush2.bf16.msra.mxu1 %v5032_v9  ;;  %3288 = vmatprep.subr.bf16.mxu0 %v5037_v10  ;;  %v5114_v9 = vld [vmem:[%s7517_s1 + $0xb80] ss:$16 sps:$4 sm:$0xff]   ;;  %v5119_v10 = vld [vmem:[%s7517_s1 + $0x964] ss:$16 sps:$4 sm:$0xff]  }
  0x7d   :  { %3329 = vmatprep.subr.bf16.mxu1 %v5040_v11  ;;  %v5122_v11 = vld [vmem:[%s7517_s1 + $0xb64] ss:$16 sps:$4 sm:$0xff]  }
  0x7f   :  { %3289 = vmatpush2.bf16.msra.mxu0 %v5035_v12  ;;  %v5117_v12 = vld [vmem:[%s7517_s1 + $0x960] ss:$16 sps:$4 sm:$0xff]  }
  0x80   :  { %3330 = vmatpush2.bf16.msra.mxu1 %v5038_v13  ;;  %3340 = vmatprep.subr.bf16.mxu0 %v5047_v14  ;;  %v5120_v13 = vld [vmem:[%s7517_s1 + $0xb60] ss:$16 sps:$4 sm:$0xff]   ;;  %v5125_v14 = vld [vmem:[%s7517_s1 + $0x944] ss:$16 sps:$4 sm:$0xff]  }
  0x81   :  { %3381 = vmatprep.subr.bf16.mxu1 %v5050_v15  ;;  %v5128_v15 = vld [vmem:[%s7517_s1 + $0xb44] ss:$16 sps:$4 sm:$0xff]  }
  0x82   :  { %3291 = vmatmul.mubr.bf16.vlgmr.msra.gmra.mxu0 %v6126_v16 }
  0x83   :  { %3332 = vmatmul.mubr.bf16.vlgmr.msra.gmra.mxu1 %v6130_v17  ;;  %3341 = vmatpush1.bf16.msra.mxu0 %v5045_v18  ;;  %v5123_v18 = vld [vmem:[%s7517_s1 + $0x940] ss:$16 sps:$4 sm:$0xff]  }
  0x84   :  { %3382 = vmatpush1.bf16.msra.mxu1 %v5048_v19  ;;  %3342 = vmatprep.subr.bf16.mxu0 %v5053_v20  ;;  %v5126_v19 = vld [vmem:[%s7517_s1 + $0xb40] ss:$16 sps:$4 sm:$0xff]   ;;  %v5131_v20 = vld [vmem:[%s7517_s1 + $0x924] ss:$16 sps:$4 sm:$0xff]  }
  0x85   :  { %3383 = vmatprep.subr.bf16.mxu1 %v5056_v21  ;;  %3372 = vmatprep.mubr.bf16.mxu0 %v6156_v24  ;;  %v5134_v21 = vld [vmem:[%s7517_s1 + $0xb24] ss:$16 sps:$4 sm:$0xff]  }
  0x86   :  { %3413 = vmatprep.mubr.bf16.mxu1 %v6160_v25 }
  0x87   :  { %3343 = vmatpush1.bf16.msra.mxu0 %v5051_v26  ;;  %v5129_v26 = vld [vmem:[%s7517_s1 + $0x920] ss:$16 sps:$4 sm:$0xff]  }
  0x88   :  { %3384 = vmatpush1.bf16.msra.mxu1 %v5054_v27  ;;  %3344 = vmatprep.subr.bf16.mxu0 %v5059_v28  ;;  %v5132_v27 = vld [vmem:[%s7517_s1 + $0xb20] ss:$16 sps:$4 sm:$0xff]   ;;  %v5137_v28 = vld [vmem:[%s7517_s1 + $0x904] ss:$16 sps:$4 sm:$0xff]  }
  0x89   :  { %3385 = vmatprep.subr.bf16.mxu1 %v5062_v29  ;;  %v5140_v29 = vld [vmem:[%s7517_s1 + $0xb04] ss:$16 sps:$4 sm:$0xff]  }
  0x8b   :  { %3345 = vmatpush1.bf16.msra.mxu0 %v5057_v30  ;;  %v5135_v30 = vld [vmem:[%s7517_s1 + $0x900] ss:$16 sps:$4 sm:$0xff]  }
  0x8c   :  { %3386 = vmatpush1.bf16.msra.mxu1 %v5060_v31  ;;  %3346 = vmatprep.subr.bf16.mxu0 %v5065_v32  ;;  %v5138_v31 = vld [vmem:[%s7517_s1 + $0xb00] ss:$16 sps:$4 sm:$0xff]   ;;  %v5147_v32 = vld [vmem:[%s7517_s1 + $0xce4] ss:$16 sps:$4 sm:$0xff]  }
  0x8d   :  { %3387 = vmatprep.subr.bf16.mxu1 %v5068_v33  ;;  %v5150_v33 = vld [vmem:[%s7517_s1 + $0xee4] ss:$16 sps:$4 sm:$0xff]  }
  0x8f   :  { %3347 = vmatpush1.bf16.msra.mxu0 %v5063_v34  ;;  %v5145_v34 = vld [vmem:[%s7517_s1 + $0xce0] ss:$16 sps:$4 sm:$0xff]  }
  0x90   :  { %3388 = vmatpush1.bf16.msra.mxu1 %v5066_v35  ;;  %3348 = vmatprep.subr.bf16.mxu0 %v5071_v38  ;;  %v5148_v35 = vld [vmem:[%s7517_s1 + $0xee0] ss:$16 sps:$4 sm:$0xff]   ;;  %v6354_v38 = vcombine.low %v6147_v22, %v6147_v22  ;;  %v5153_v22 = vld [vmem:[%s7517_s1 + $0xcc4] ss:$16 sps:$4 sm:$0xff]  }
  0x91   :  { %3389 = vmatprep.subr.bf16.mxu1 %v5074_v39  ;;  %v6358_v39 = vcombine.low %v6152_v23, %v6152_v23  ;;  %v5156_v23 = vld [vmem:[%s7517_s1 + $0xec4] ss:$16 sps:$4 sm:$0xff]  }
  0x93   :  { %3349 = vmatpush1.bf16.msra.mxu0 %v5069_v40  ;;  %v6363_v40 = vld [vmem:[%s7518_s0 + $0x30] sm:$0xff] }
  0x94   :  { %3390 = vmatpush1.bf16.msra.mxu1 %v5072_v41  ;;  %3350 = vmatprep.subr.bf16.mxu0 %v5077_v42  ;;  %v6368_v41 = vld [vmem:[%s7518_s0 + $0x38] sm:$0xff]  ;;  %v6378_v42 = vcombine.high %v6363_v40, %v6363_v40 }
  0x95   :  { %3391 = vmatprep.subr.bf16.mxu1 %v5080_v43  ;;  %v6382_v43 = vcombine.high %v6368_v41, %v6368_v41 }
  0x97   :  { %3351 = vmatpush1.bf16.msra.mxu0 %v5075_v44  ;;  %v5151_v44 = vld [vmem:[%s7517_s1 + $0xcc0] ss:$16 sps:$4 sm:$0xff]  }
  0x98   :  { %3392 = vmatpush1.bf16.msra.mxu1 %v5078_v45  ;;  %3352 = vmatprep.subr.bf16.mxu0 %v5083_v46  ;;  %v5154_v45 = vld [vmem:[%s7517_s1 + $0xec0] ss:$16 sps:$4 sm:$0xff]   ;;  %v5159_v46 = vld [vmem:[%s7517_s1 + $0xca4] ss:$16 sps:$4 sm:$0xff]  }
  0x99   :  { %3393 = vmatprep.subr.bf16.mxu1 %v5086_v48  ;;  %v5162_v48 = vld [vmem:[%s7517_s1 + $0xea4] ss:$16 sps:$4 sm:$0xff]  }
  0x9b   :  { %3353 = vmatpush1.bf16.msra.mxu0 %v5081_v49  ;;  %v5157_v49 = vld [vmem:[%s7517_s1 + $0xca0] ss:$16 sps:$4 sm:$0xff]  }
  0x9c   :  { %3394 = vmatpush1.bf16.msra.mxu1 %v5084_v50  ;;  %3354 = vmatprep.subr.bf16.mxu0 %v5089_v52  ;;  %v5160_v50 = vld [vmem:[%s7517_s1 + $0xea0] ss:$16 sps:$4 sm:$0xff]   ;;  %v5165_v52 = vld [vmem:[%s7517_s1 + $0xc84] ss:$16 sps:$4 sm:$0xff]  }
  0x9d   :  { %3395 = vmatprep.subr.bf16.mxu1 %v5092_v53  ;;  %v5168_v53 = vld [vmem:[%s7517_s1 + $0xe84] ss:$16 sps:$4 sm:$0xff]  }
  0x9f   :  { %3355 = vmatpush1.bf16.msra.mxu0 %v5087_v54  ;;  %v5163_v54 = vld [vmem:[%s7517_s1 + $0xc80] ss:$16 sps:$4 sm:$0xff]  }
  0xa0   :  { %3396 = vmatpush1.bf16.msra.mxu1 %v5090_v55  ;;  %3356 = vmatprep.subr.bf16.mxu0 %v5095_v56  ;;  %v5166_v55 = vld [vmem:[%s7517_s1 + $0xe80] ss:$16 sps:$4 sm:$0xff]   ;;  %v5171_v56 = vld [vmem:[%s7517_s1 + $0xc64] ss:$16 sps:$4 sm:$0xff]  }
  0xa1   :  { %3397 = vmatprep.subr.bf16.mxu1 %v5098_v57  ;;  %v5174_v57 = vld [vmem:[%s7517_s1 + $0xe64] ss:$16 sps:$4 sm:$0xff]  }
  0xa3   :  { %3357 = vmatpush2.bf16.msra.mxu0 %v5093_v58  ;;  %v5169_v58 = vld [vmem:[%s7517_s1 + $0xc60] ss:$16 sps:$4 sm:$0xff]  }
  0xa4   :  { %3398 = vmatpush2.bf16.msra.mxu1 %v5096_v59  ;;  %3358 = vmatprep.subr.bf16.mxu0 %v5101_v60  ;;  %v5172_v59 = vld [vmem:[%s7517_s1 + $0xe60] ss:$16 sps:$4 sm:$0xff]   ;;  %v5177_v60 = vld [vmem:[%s7517_s1 + $0xc44] ss:$16 sps:$4 sm:$0xff]  }
  0xa5   :  { %3399 = vmatprep.subr.bf16.mxu1 %v5104_v61  ;;  %v5180_v61 = vld [vmem:[%s7517_s1 + $0xe44] ss:$16 sps:$4 sm:$0xff]  }
  0xa7   :  { %3359 = vmatpush2.bf16.msra.mxu0 %v5099_v62  ;;  %v5175_v62 = vld [vmem:[%s7517_s1 + $0xc40] ss:$16 sps:$4 sm:$0xff]  }
  0xa8   :  { %3400 = vmatpush2.bf16.msra.mxu1 %v5102_v63  ;;  %3360 = vmatprep.subr.bf16.mxu0 %v5107_v0  ;;  %v5178_v63 = vld [vmem:[%s7517_s1 + $0xe40] ss:$16 sps:$4 sm:$0xff]   ;;  %v5183_v0 = vld [vmem:[%s7517_s1 + $0xc24] ss:$16 sps:$4 sm:$0xff]  }
  0xa9   :  { %3401 = vmatprep.subr.bf16.mxu1 %v5110_v1  ;;  %v5186_v1 = vld [vmem:[%s7517_s1 + $0xe24] ss:$16 sps:$4 sm:$0xff]  }
  0xab   :  { %3361 = vmatpush2.bf16.msra.mxu0 %v5105_v2  ;;  %v5181_v2 = vld [vmem:[%s7517_s1 + $0xc20] ss:$16 sps:$4 sm:$0xff]  }
  0xac   :  { %3402 = vmatpush2.bf16.msra.mxu1 %v5108_v3  ;;  %3362 = vmatprep.subr.bf16.mxu0 %v5113_v4  ;;  %v5184_v3 = vld [vmem:[%s7517_s1 + $0xe20] ss:$16 sps:$4 sm:$0xff]   ;;  %v5189_v4 = vld [vmem:[%s7517_s1 + $0xc04] ss:$16 sps:$4 sm:$0xff]  }
  0xad   :  { %3403 = vmatprep.subr.bf16.mxu1 %v5116_v5  ;;  %v5192_v5 = vld [vmem:[%s7517_s1 + $0xe04] ss:$16 sps:$4 sm:$0xff]  }
  0xaf   :  { %3363 = vmatpush2.bf16.msra.mxu0 %v5111_v8  ;;  %v5187_v8 = vld [vmem:[%s7517_s1 + $0xc00] ss:$16 sps:$4 sm:$0xff]  }
  0xb0   :  { %3404 = vmatpush2.bf16.msra.mxu1 %v5114_v9  ;;  %3364 = vmatprep.subr.bf16.mxu0 %v5119_v10  ;;  %v5190_v9 = vld [vmem:[%s7517_s1 + $0xe00] ss:$16 sps:$4 sm:$0xff]   ;;  %v5195_v10 = vld [vmem:[%s7517_s1 + $0xde4] ss:$16 sps:$4 sm:$0xff]  }
  0xb1   :  { %3405 = vmatprep.subr.bf16.mxu1 %v5122_v11  ;;  %v5198_v11 = vld [vmem:[%s7517_s1 + $0xfe4] ss:$16 sps:$4 sm:$0xff]  }
  0xb3   :  { %3365 = vmatpush2.bf16.msra.mxu0 %v5117_v12  ;;  %v5193_v12 = vld [vmem:[%s7517_s1 + $0xde0] ss:$16 sps:$4 sm:$0xff]  }
  0xb4   :  { %3406 = vmatpush2.bf16.msra.mxu1 %v5120_v13  ;;  %3366 = vmatprep.subr.bf16.mxu0 %v5125_v14  ;;  %v5196_v13 = vld [vmem:[%s7517_s1 + $0xfe0] ss:$16 sps:$4 sm:$0xff]   ;;  %v5201_v14 = vld [vmem:[%s7517_s1 + $0xdc4] ss:$16 sps:$4 sm:$0xff]  }
  0xb5   :  { %3407 = vmatprep.subr.bf16.mxu1 %v5128_v15  ;;  %v5204_v15 = vld [vmem:[%s7517_s1 + $0xfc4] ss:$16 sps:$4 sm:$0xff]  }
  0xb7   :  { %3367 = vmatpush2.bf16.msra.mxu0 %v5123_v18  ;;  %v5199_v18 = vld [vmem:[%s7517_s1 + $0xdc0] ss:$16 sps:$4 sm:$0xff]  }
  0xb8   :  { %3408 = vmatpush2.bf16.msra.mxu1 %v5126_v19  ;;  %3368 = vmatprep.subr.bf16.mxu0 %v5131_v20  ;;  %v5202_v19 = vld [vmem:[%s7517_s1 + $0xfc0] ss:$16 sps:$4 sm:$0xff]   ;;  %v5207_v20 = vld [vmem:[%s7517_s1 + $0xda4] ss:$16 sps:$4 sm:$0xff]  }
  0xb9   :  { %3409 = vmatprep.subr.bf16.mxu1 %v5134_v21  ;;  %v5210_v21 = vld [vmem:[%s7517_s1 + $0xfa4] ss:$16 sps:$4 sm:$0xff]  }
  0xbb   :  { %3369 = vmatpush2.bf16.msra.mxu0 %v5129_v26  ;;  %v5205_v26 = vld [vmem:[%s7517_s1 + $0xda0] ss:$16 sps:$4 sm:$0xff]  }
  0xbc   :  { %3410 = vmatpush2.bf16.msra.mxu1 %v5132_v27  ;;  %3370 = vmatprep.subr.bf16.mxu0 %v5137_v28  ;;  %v5208_v27 = vld [vmem:[%s7517_s1 + $0xfa0] ss:$16 sps:$4 sm:$0xff]   ;;  %v5213_v28 = vld [vmem:[%s7517_s1 + $0xd84] ss:$16 sps:$4 sm:$0xff]  }
  0xbd   :  { %3411 = vmatprep.subr.bf16.mxu1 %v5140_v29  ;;  %v5216_v29 = vld [vmem:[%s7517_s1 + $0xf84] ss:$16 sps:$4 sm:$0xff]  }
  0xbf   :  { %3371 = vmatpush2.bf16.msra.mxu0 %v5135_v30  ;;  %v5211_v30 = vld [vmem:[%s7517_s1 + $0xd80] ss:$16 sps:$4 sm:$0xff]  }
  0xc0   :  { %3412 = vmatpush2.bf16.msra.mxu1 %v5138_v31  ;;  %3422 = vmatprep.subr.bf16.mxu0 %v5147_v32  ;;  %v5214_v31 = vld [vmem:[%s7517_s1 + $0xf80] ss:$16 sps:$4 sm:$0xff]   ;;  %v5219_v32 = vld [vmem:[%s7517_s1 + $0xd64] ss:$16 sps:$4 sm:$0xff]  }
  0xc1   :  { %3463 = vmatprep.subr.bf16.mxu1 %v5150_v33  ;;  %v5222_v33 = vld [vmem:[%s7517_s1 + $0xf64] ss:$16 sps:$4 sm:$0xff]  }
  0xc2   :  { %3373 = vmatmul.mubr.bf16.vlgmr.msra.gmra.mxu0 %v6354_v38 }
  0xc3   :  { %3414 = vmatmul.mubr.bf16.vlgmr.msra.gmra.mxu1 %v6358_v39  ;;  %3423 = vmatpush1.bf16.msra.mxu0 %v5145_v34  ;;  %v5217_v34 = vld [vmem:[%s7517_s1 + $0xd60] ss:$16 sps:$4 sm:$0xff]  }
  0xc4   :  { %3464 = vmatpush1.bf16.msra.mxu1 %v5148_v35  ;;  %3424 = vmatprep.subr.bf16.mxu0 %v5153_v22  ;;  %v5220_v35 = vld [vmem:[%s7517_s1 + $0xf60] ss:$16 sps:$4 sm:$0xff]   ;;  %v5225_v22 = vld [vmem:[%s7517_s1 + $0xd44] ss:$16 sps:$4 sm:$0xff]  }
  0xc5   :  { %3465 = vmatprep.subr.bf16.mxu1 %v5156_v23  ;;  %3454 = vmatprep.mubr.bf16.mxu0 %v6378_v42  ;;  %v5228_v23 = vld [vmem:[%s7517_s1 + $0xf44] ss:$16 sps:$4 sm:$0xff]  }
  0xc6   :  { %3495 = vmatprep.mubr.bf16.mxu1 %v6382_v43 }
  0xc7   :  { %3425 = vmatpush1.bf16.msra.mxu0 %v5151_v44  ;;  %v5223_v44 = vld [vmem:[%s7517_s1 + $0xd40] ss:$16 sps:$4 sm:$0xff]  }
  0xc8   :  { %3466 = vmatpush1.bf16.msra.mxu1 %v5154_v45  ;;  %3426 = vmatprep.subr.bf16.mxu0 %v5159_v46  ;;  %v5226_v45 = vld [vmem:[%s7517_s1 + $0xf40] ss:$16 sps:$4 sm:$0xff]   ;;  %v5231_v46 = vld [vmem:[%s7517_s1 + $0xd24] ss:$16 sps:$4 sm:$0xff]  }
  0xc9   :  { %3467 = vmatprep.subr.bf16.mxu1 %v5162_v48  ;;  %v5234_v48 = vld [vmem:[%s7517_s1 + $0xf24] ss:$16 sps:$4 sm:$0xff]  }
  0xcb   :  { %3427 = vmatpush1.bf16.msra.mxu0 %v5157_v49  ;;  %v5229_v49 = vld [vmem:[%s7517_s1 + $0xd20] ss:$16 sps:$4 sm:$0xff]  }
  0xcc   :  { %3468 = vmatpush1.bf16.msra.mxu1 %v5160_v50  ;;  %3428 = vmatprep.subr.bf16.mxu0 %v5165_v52  ;;  %v5232_v50 = vld [vmem:[%s7517_s1 + $0xf20] ss:$16 sps:$4 sm:$0xff]   ;;  %v5237_v52 = vld [vmem:[%s7517_s1 + $0xd04] ss:$16 sps:$4 sm:$0xff]  }
  0xcd   :  { %3469 = vmatprep.subr.bf16.mxu1 %v5168_v53  ;;  %v5240_v53 = vld [vmem:[%s7517_s1 + $0xf04] ss:$16 sps:$4 sm:$0xff]  }
  0xcf   :  { %3429 = vmatpush1.bf16.msra.mxu0 %v5163_v54  ;;  %v5235_v54 = vld [vmem:[%s7517_s1 + $0xd00] ss:$16 sps:$4 sm:$0xff]  }
  0xd0   :  { %3470 = vmatpush1.bf16.msra.mxu1 %v5166_v55  ;;  %3430 = vmatprep.subr.bf16.mxu0 %v5171_v56  ;;  %v5238_v55 = vld [vmem:[%s7517_s1 + $0xf00] ss:$16 sps:$4 sm:$0xff]   ;;  %v5247_v56 = vld [vmem:[%s7517_s1 + $0xec] ss:$16 sps:$4 sm:$0xff]  }
  0xd1   :  { %3471 = vmatprep.subr.bf16.mxu1 %v5174_v57  ;;  %v5250_v57 = vld [vmem:[%s7517_s1 + $0x2ec] ss:$16 sps:$4 sm:$0xff]  }
  0xd3   :  { %3431 = vmatpush1.bf16.msra.mxu0 %v5169_v58  ;;  %v6570_v58 = vcombine.low %v6363_v40, %v6363_v40  ;;  %v5256_v40 = vld [vmem:[%s7517_s1 + $0x2cc] ss:$16 sps:$4 sm:$0xff]  }
  0xd4   :  { %3472 = vmatpush1.bf16.msra.mxu1 %v5172_v59  ;;  %3432 = vmatprep.subr.bf16.mxu0 %v5177_v60  ;;  %v6574_v59 = vcombine.low %v6368_v41, %v6368_v41  ;;  %v5245_v60 = vld [vmem:[%s7517_s1 + $0xe8] ss:$16 sps:$4 sm:$0xff]  }
  0xd5   :  { %3473 = vmatprep.subr.bf16.mxu1 %v5180_v61  ;;  %v5248_v61 = vld [vmem:[%s7517_s1 + $0x2e8] ss:$16 sps:$4 sm:$0xff]  }
  0xd7   :  { %3433 = vmatpush1.bf16.msra.mxu0 %v5175_v62  ;;  %v5253_v62 = vld [vmem:[%s7517_s1 + $0xcc] ss:$16 sps:$4 sm:$0xff]  }
  0xd8   :  { %3474 = vmatpush1.bf16.msra.mxu1 %v5178_v63  ;;  %3434 = vmatprep.subr.bf16.mxu0 %v5183_v0  ;;  %v5251_v0 = vld [vmem:[%s7517_s1 + $0xc8] ss:$16 sps:$4 sm:$0xff]  }
  0xd9   :  { %3475 = vmatprep.subr.bf16.mxu1 %v5186_v1  ;;  %v5254_v1 = vld [vmem:[%s7517_s1 + $0x2c8] ss:$16 sps:$4 sm:$0xff]  }
  0xdb   :  { %3435 = vmatpush1.bf16.msra.mxu0 %v5181_v2 }
  0xdc   :  { %3476 = vmatpush1.bf16.msra.mxu1 %v5184_v3  ;;  %3436 = vmatprep.subr.bf16.mxu0 %v5189_v4  ;;  %v5259_v3 = vld [vmem:[%s7517_s1 + $0xac] ss:$16 sps:$4 sm:$0xff]  }
  0xdd   :  { %3477 = vmatprep.subr.bf16.mxu1 %v5192_v5 }
  0xdf   :  { %3437 = vmatpush1.bf16.msra.mxu0 %v5187_v8  ;;  %v5262_v8 = vld [vmem:[%s7517_s1 + $0x2ac] ss:$16 sps:$4 sm:$0xff]  }
  0xe0   :  { %3478 = vmatpush1.bf16.msra.mxu1 %v5190_v9  ;;  %3438 = vmatprep.subr.bf16.mxu0 %v5195_v10 }
  0xe1   :  { %3479 = vmatprep.subr.bf16.mxu1 %v5198_v11 }
  0xe3   :  { %3439 = vmatpush2.bf16.msra.mxu0 %v5193_v12  ;;  %v5257_v12 = vld [vmem:[%s7517_s1 + $0xa8] ss:$16 sps:$4 sm:$0xff]  }
  0xe4   :  { %3480 = vmatpush2.bf16.msra.mxu1 %v5196_v13  ;;  %3440 = vmatprep.subr.bf16.mxu0 %v5201_v14  ;;  %v5260_v13 = vld [vmem:[%s7517_s1 + $0x2a8] ss:$16 sps:$4 sm:$0xff]  }
  0xe5   :  { %3481 = vmatprep.subr.bf16.mxu1 %v5204_v15 }
  0xe7   :  { %3441 = vmatpush2.bf16.msra.mxu0 %v5199_v18  ;;  %v5263_v18 = vld [vmem:[%s7517_s1 + $0x88] ss:$16 sps:$4 sm:$0xff]  }
  0xe8   :  { %3482 = vmatpush2.bf16.msra.mxu1 %v5202_v19  ;;  %3442 = vmatprep.subr.bf16.mxu0 %v5207_v20  ;;  %v5266_v19 = vld [vmem:[%s7517_s1 + $0x288] ss:$16 sps:$4 sm:$0xff]   ;;  %v5271_v20 = vld [vmem:[%s7517_s1 + $0x6c] ss:$16 sps:$4 sm:$0xff]  }
  0xe9   :  { %3483 = vmatprep.subr.bf16.mxu1 %v5210_v21  ;;  %v5274_v21 = vld [vmem:[%s7517_s1 + $0x26c] ss:$16 sps:$4 sm:$0xff]  }
  0xeb   :  { %3443 = vmatpush2.bf16.msra.mxu0 %v5205_v26  ;;  %v5269_v26 = vld [vmem:[%s7517_s1 + $0x68] ss:$16 sps:$4 sm:$0xff]  }
  0xec   :  { %3484 = vmatpush2.bf16.msra.mxu1 %v5208_v27  ;;  %3444 = vmatprep.subr.bf16.mxu0 %v5213_v28  ;;  %v5272_v27 = vld [vmem:[%s7517_s1 + $0x268] ss:$16 sps:$4 sm:$0xff]   ;;  %v5277_v28 = vld [vmem:[%s7517_s1 + $0x4c] ss:$16 sps:$4 sm:$0xff]  }
  0xed   :  { %3485 = vmatprep.subr.bf16.mxu1 %v5216_v29  ;;  %v5280_v29 = vld [vmem:[%s7517_s1 + $0x24c] ss:$16 sps:$4 sm:$0xff]  }
  0xef   :  { %3445 = vmatpush2.bf16.msra.mxu0 %v5211_v30  ;;  %v5275_v30 = vld [vmem:[%s7517_s1 + $0x48] ss:$16 sps:$4 sm:$0xff]  }
  0xf0   :  { %3486 = vmatpush2.bf16.msra.mxu1 %v5214_v31  ;;  %3446 = vmatprep.subr.bf16.mxu0 %v5219_v32  ;;  %v5278_v31 = vld [vmem:[%s7517_s1 + $0x248] ss:$16 sps:$4 sm:$0xff]   ;;  %v5283_v32 = vld [vmem:[%s7517_s1 + $0x2c] ss:$16 sps:$4 sm:$0xff]  }
  0xf1   :  { %3487 = vmatprep.subr.bf16.mxu1 %v5222_v33  ;;  %v5286_v33 = vld [vmem:[%s7517_s1 + $0x22c] ss:$16 sps:$4 sm:$0xff]  }
  0xf3   :  { %3447 = vmatpush2.bf16.msra.mxu0 %v5217_v34  ;;  %v5281_v34 = vld [vmem:[%s7517_s1 + $0x28] ss:$16 sps:$4 sm:$0xff]  }
  0xf4   :  { %3488 = vmatpush2.bf16.msra.mxu1 %v5220_v35  ;;  %3448 = vmatprep.subr.bf16.mxu0 %v5225_v22  ;;  %v5284_v35 = vld [vmem:[%s7517_s1 + $0x228] ss:$16 sps:$4 sm:$0xff]   ;;  %v5289_v22 = vld [vmem:[%s7517_s1 + $0xc] ss:$16 sps:$4 sm:$0xff]  }
  0xf5   :  { %3489 = vmatprep.subr.bf16.mxu1 %v5228_v23  ;;  %v5292_v23 = vld [vmem:[%s7517_s1 + $0x20c] ss:$16 sps:$4 sm:$0xff]  }
  0xf7   :  { %3449 = vmatpush2.bf16.msra.mxu0 %v5223_v44  ;;  %v5287_v44 = vld [vmem:[%s7517_s1 + $0x8] ss:$16 sps:$4 sm:$0xff]  }
  0xf8   :  { %3490 = vmatpush2.bf16.msra.mxu1 %v5226_v45  ;;  %3450 = vmatprep.subr.bf16.mxu0 %v5231_v46  ;;  %v5290_v45 = vld [vmem:[%s7517_s1 + $0x208] ss:$16 sps:$4 sm:$0xff]   ;;  %v5295_v46 = vld [vmem:[%s7517_s1 + $0x1ec] ss:$16 sps:$4 sm:$0xff]  }
  0xf9   :  { %3491 = vmatprep.subr.bf16.mxu1 %v5234_v48  ;;  %v5298_v48 = vld [vmem:[%s7517_s1 + $0x3ec] ss:$16 sps:$4 sm:$0xff]  }
  0xfb   :  { %3451 = vmatpush2.bf16.msra.mxu0 %v5229_v49  ;;  %v5293_v49 = vld [vmem:[%s7517_s1 + $0x1e8] ss:$16 sps:$4 sm:$0xff]  }
  0xfc   :  { %3492 = vmatpush2.bf16.msra.mxu1 %v5232_v50  ;;  %3452 = vmatprep.subr.bf16.mxu0 %v5237_v52  ;;  %v5296_v50 = vld [vmem:[%s7517_s1 + $0x3e8] ss:$16 sps:$4 sm:$0xff]   ;;  %v5301_v52 = vld [vmem:[%s7517_s1 + $0x1cc] ss:$16 sps:$4 sm:$0xff]  }
  0xfd   :  { %3493 = vmatprep.subr.bf16.mxu1 %v5240_v53  ;;  %v5304_v53 = vld [vmem:[%s7517_s1 + $0x3cc] ss:$16 sps:$4 sm:$0xff]  }
  0xff   :  { %3453 = vmatpush2.bf16.msra.mxu0 %v5235_v54  ;;  %v5299_v54 = vld [vmem:[%s7517_s1 + $0x1c8] ss:$16 sps:$4 sm:$0xff]  }
 0x100   :  { %3494 = vmatpush2.bf16.msra.mxu1 %v5238_v55  ;;  %3504 = vmatprep.subr.bf16.mxu0 %v5247_v56  ;;  %v5302_v55 = vld [vmem:[%s7517_s1 + $0x3c8] ss:$16 sps:$4 sm:$0xff]   ;;  %v5307_v56 = vld [vmem:[%s7517_s1 + $0x1ac] ss:$16 sps:$4 sm:$0xff]  }
 0x101   :  { %3545 = vmatprep.subr.bf16.mxu1 %v5250_v57  ;;  %v5310_v57 = vld [vmem:[%s7517_s1 + $0x3ac] ss:$16 sps:$4 sm:$0xff]  }
 0x102   :  { %v3210_v41 = vpop.f32.mrf.mxu0  ;;  %3455 = vmatmul.mubr.bf16.vlgmr.msra.gmra.mxu0 %v6570_v58 }
 0x103   :  { %v3251_v63 = vpop.f32.mrf.mxu1  ;;  %3496 = vmatmul.mubr.bf16.vlgmr.msra.gmra.mxu1 %v6574_v59  ;;  %3505 = vmatpush1.bf16.msra.mxu0 %v5245_v60  ;;  %v5305_v60 = vld [vmem:[%s7517_s1 + $0x1a8] ss:$16 sps:$4 sm:$0xff]  }
 0x104   :  { %v6596_v2 = vadd.f32 %v3251_v63, %v3210_v41  ;;  %3546 = vmatpush1.bf16.msra.mxu1 %v5248_v61  ;;  %v3212_v4 = vpop.f32.mrf.mxu0  ;;  %3506 = vmatprep.subr.bf16.mxu0 %v5253_v62  ;;  %v5308_v61 = vld [vmem:[%s7517_s1 + $0x3a8] ss:$16 sps:$4 sm:$0xff]   ;;  %v5313_v62 = vld [vmem:[%s7517_s1 + $0x18c] ss:$16 sps:$4 sm:$0xff]  }
 0x105   :  { %v3253_v5 = vpop.f32.mrf.mxu1  ;;  %3547 = vmatprep.subr.bf16.mxu1 %v5256_v40  ;;  %3536 = vmatprep.mubr.bf16.mxu0 %v5837_v47  ;;  %v5265_v47 = vld [vmem:[%s7517_s1 + $0x8c] ss:$16 sps:$4 sm:$0xff]   ;;  %v5311_v41 = vld [vmem:[%s7517_s1 + $0x188] ss:$16 sps:$4 sm:$0xff]  }
 0x106   :  { %v6604_v9 = vadd.f32 %v3253_v5, %v3212_v4  ;;  %3577 = vmatprep.mubr.bf16.mxu1 %v5848_v51  ;;  %v3214_v10 = vpop.f32.mrf.mxu0  ;;  %v5268_v51 = vld [vmem:[%s7517_s1 + $0x28c] ss:$16 sps:$4 sm:$0xff]   ;;  %v5314_v63 = vld [vmem:[%s7517_s1 + $0x388] ss:$16 sps:$4 sm:$0xff]  }
 0x107   :  { %v3255_v11 = vpop.f32.mrf.mxu1  ;;  %3507 = vmatpush1.bf16.msra.mxu0 %v5251_v0  ;;  %v5316_v40 = vld [vmem:[%s7517_s1 + $0x38c] ss:$16 sps:$4 sm:$0xff]   ;;  %v5320_v4 = vld [vmem:[%s7517_s1 + $0x368] ss:$16 sps:$4 sm:$0xff]  }
 0x108   :  { %3548 = vmatpush1.bf16.msra.mxu1 %v5254_v1  ;;  %v3215_v14 = vpop.f32.mrf.mxu0  ;;  %3508 = vmatprep.subr.bf16.mxu0 %v5259_v3  ;;  %v5319_v0 = vld [vmem:[%s7517_s1 + $0x16c] ss:$16 sps:$4 sm:$0xff]   ;;  %v5317_v3 = vld [vmem:[%s7517_s1 + $0x168] ss:$16 sps:$4 sm:$0xff]  }
 0x109   :  { %v3256_v15 = vpop.f32.mrf.mxu1  ;;  %3549 = vmatprep.subr.bf16.mxu1 %v5262_v8  ;;  %v5322_v1 = vld [vmem:[%s7517_s1 + $0x36c] ss:$16 sps:$4 sm:$0xff]   ;;  %v5323_v10 = vld [vmem:[%s7517_s1 + $0x148] ss:$16 sps:$4 sm:$0xff]  }
 0x10a   :  { %v5325_v5 = vld [vmem:[%s7517_s1 + $0x14c] ss:$16 sps:$4 sm:$0xff]   ;;  %v5326_v11 = vld [vmem:[%s7517_s1 + $0x348] ss:$16 sps:$4 sm:$0xff]  }
 0x10b   :  { %3509 = vmatpush1.bf16.msra.mxu0 %v5257_v12  ;;  %v5328_v8 = vld [vmem:[%s7517_s1 + $0x34c] ss:$16 sps:$4 sm:$0xff]   ;;  %v5329_v14 = vld [vmem:[%s7517_s1 + $0x128] ss:$16 sps:$4 sm:$0xff]  }
 0x10c   :  { %3550 = vmatpush1.bf16.msra.mxu1 %v5260_v13  ;;  %3510 = vmatprep.subr.bf16.mxu0 %v5265_v47  ;;  %v5331_v12 = vld [vmem:[%s7517_s1 + $0x12c] ss:$16 sps:$4 sm:$0xff]   ;;  %v5332_v15 = vld [vmem:[%s7517_s1 + $0x328] ss:$16 sps:$4 sm:$0xff]  }
 0x10d   :  { %3551 = vmatprep.subr.bf16.mxu1 %v5268_v51  ;;  %v5334_v13 = vld [vmem:[%s7517_s1 + $0x32c] ss:$16 sps:$4 sm:$0xff]  }
 0x10e   :  { %v5337_v47 = vld [vmem:[%s7517_s1 + $0x10c] ss:$16 sps:$4 sm:$0xff]  }
 0x10f   :  { %3511 = vmatpush1.bf16.msra.mxu0 %v5263_v18  ;;  %v5340_v51 = vld [vmem:[%s7517_s1 + $0x30c] ss:$16 sps:$4 sm:$0xff]   ;;  %v5335_v18 = vld [vmem:[%s7517_s1 + $0x108] ss:$16 sps:$4 sm:$0xff]  }
 0x110   :  { %3552 = vmatpush1.bf16.msra.mxu1 %v5266_v19  ;;  %3512 = vmatprep.subr.bf16.mxu0 %v5271_v20  ;;  %v5338_v19 = vld [vmem:[%s7517_s1 + $0x308] ss:$16 sps:$4 sm:$0xff]   ;;  %v5343_v20 = vld [vmem:[%s7517_s1 + $0x4ec] ss:$16 sps:$4 sm:$0xff]  }
 0x111   :  { %3553 = vmatprep.subr.bf16.mxu1 %v5274_v21  ;;  %v5346_v21 = vld [vmem:[%s7517_s1 + $0x6ec] ss:$16 sps:$4 sm:$0xff]  }
 0x113   :  { %3513 = vmatpush1.bf16.msra.mxu0 %v5269_v26  ;;  %v5341_v26 = vld [vmem:[%s7517_s1 + $0x4e8] ss:$16 sps:$4 sm:$0xff]  }
 0x114   :  { %3554 = vmatpush1.bf16.msra.mxu1 %v5272_v27  ;;  %3514 = vmatprep.subr.bf16.mxu0 %v5277_v28  ;;  %v5344_v27 = vld [vmem:[%s7517_s1 + $0x6e8] ss:$16 sps:$4 sm:$0xff]   ;;  %v5349_v28 = vld [vmem:[%s7517_s1 + $0x4cc] ss:$16 sps:$4 sm:$0xff]  }
 0x115   :  { %3555 = vmatprep.subr.bf16.mxu1 %v5280_v29  ;;  %v5352_v29 = vld [vmem:[%s7517_s1 + $0x6cc] ss:$16 sps:$4 sm:$0xff]  }
 0x117   :  { %3515 = vmatpush1.bf16.msra.mxu0 %v5275_v30 }
 0x118   :  { %3556 = vmatpush1.bf16.msra.mxu1 %v5278_v31  ;;  %3516 = vmatprep.subr.bf16.mxu0 %v5283_v32 }
 0x119   :  { %3557 = vmatprep.subr.bf16.mxu1 %v5286_v33  ;;  %v5347_v33 = vld [vmem:[%s7517_s1 + $0x4c8] ss:$16 sps:$4 sm:$0xff]  }
 0x11b   :  { %3517 = vmatpush1.bf16.msra.mxu0 %v5281_v34  ;;  %v5350_v34 = vld [vmem:[%s7517_s1 + $0x6c8] ss:$16 sps:$4 sm:$0xff]  }
 0x11c   :  { %3558 = vmatpush1.bf16.msra.mxu1 %v5284_v35  ;;  %3518 = vmatprep.subr.bf16.mxu0 %v5289_v22 }
 0x11d   :  { %3559 = vmatprep.subr.bf16.mxu1 %v5292_v23 }
 0x11f   :  { %3519 = vmatpush1.bf16.msra.mxu0 %v5287_v44 }
 0x120   :  { %3560 = vmatpush1.bf16.msra.mxu1 %v5290_v45  ;;  %3520 = vmatprep.subr.bf16.mxu0 %v5295_v46 }
 0x121   :  { %3561 = vmatprep.subr.bf16.mxu1 %v5298_v48  ;;  %v5353_v48 = vld [vmem:[%s7517_s1 + $0x4a8] ss:$16 sps:$4 sm:$0xff]  }
 0x123   :  { %3521 = vmatpush2.bf16.msra.mxu0 %v5293_v49  ;;  %v5356_v49 = vld [vmem:[%s7517_s1 + $0x6a8] ss:$16 sps:$4 sm:$0xff]  }
 0x124   :  { %3562 = vmatpush2.bf16.msra.mxu1 %v5296_v50  ;;  %3522 = vmatprep.subr.bf16.mxu0 %v5301_v52  ;;  %v5359_v52 = vld [vmem:[%s7517_s1 + $0x488] ss:$16 sps:$4 sm:$0xff]  }
 0x125   :  { %3563 = vmatprep.subr.bf16.mxu1 %v5304_v53  ;;  %v5362_v53 = vld [vmem:[%s7517_s1 + $0x688] ss:$16 sps:$4 sm:$0xff]  }
 0x127   :  { %3523 = vmatpush2.bf16.msra.mxu0 %v5299_v54  ;;  %v5367_v54 = vld [vmem:[%s7517_s1 + $0x46c] ss:$16 sps:$4 sm:$0xff]  }
 0x128   :  { %3564 = vmatpush2.bf16.msra.mxu1 %v5302_v55  ;;  %3524 = vmatprep.subr.bf16.mxu0 %v5307_v56  ;;  %v5370_v55 = vld [vmem:[%s7517_s1 + $0x66c] ss:$16 sps:$4 sm:$0xff]   ;;  %v5365_v56 = vld [vmem:[%s7517_s1 + $0x468] ss:$16 sps:$4 sm:$0xff]  }
 0x129   :  { %3565 = vmatprep.subr.bf16.mxu1 %v5310_v57  ;;  %v5368_v57 = vld [vmem:[%s7517_s1 + $0x668] ss:$16 sps:$4 sm:$0xff]  }
 0x12b   :  { %3525 = vmatpush2.bf16.msra.mxu0 %v5305_v60  ;;  %v5373_v60 = vld [vmem:[%s7517_s1 + $0x44c] ss:$16 sps:$4 sm:$0xff]  }
 0x12c   :  { %3566 = vmatpush2.bf16.msra.mxu1 %v5308_v61  ;;  %3526 = vmatprep.subr.bf16.mxu0 %v5313_v62  ;;  %v5376_v61 = vld [vmem:[%s7517_s1 + $0x64c] ss:$16 sps:$4 sm:$0xff]   ;;  %v5371_v62 = vld [vmem:[%s7517_s1 + $0x448] ss:$16 sps:$4 sm:$0xff]  }
 0x12d   :  { %3567 = vmatprep.subr.bf16.mxu1 %v5316_v40  ;;  %v5374_v40 = vld [vmem:[%s7517_s1 + $0x648] ss:$16 sps:$4 sm:$0xff]  }
 0x12f   :  { %3527 = vmatpush2.bf16.msra.mxu0 %v5311_v41  ;;  %v5379_v41 = vld [vmem:[%s7517_s1 + $0x42c] ss:$16 sps:$4 sm:$0xff]  }
 0x130   :  { %3568 = vmatpush2.bf16.msra.mxu1 %v5314_v63  ;;  %3528 = vmatprep.subr.bf16.mxu0 %v5319_v0  ;;  %v5382_v63 = vld [vmem:[%s7517_s1 + $0x62c] ss:$16 sps:$4 sm:$0xff]   ;;  %v5377_v0 = vld [vmem:[%s7517_s1 + $0x428] ss:$16 sps:$4 sm:$0xff]  }
 0x131   :  { %3569 = vmatprep.subr.bf16.mxu1 %v5322_v1  ;;  %v5380_v1 = vld [vmem:[%s7517_s1 + $0x628] ss:$16 sps:$4 sm:$0xff]  }
 0x133   :  { %3529 = vmatpush2.bf16.msra.mxu0 %v5317_v3  ;;  %v5385_v3 = vld [vmem:[%s7517_s1 + $0x40c] ss:$16 sps:$4 sm:$0xff]  }
 0x134   :  { %3570 = vmatpush2.bf16.msra.mxu1 %v5320_v4  ;;  %3530 = vmatprep.subr.bf16.mxu0 %v5325_v5  ;;  %v5388_v4 = vld [vmem:[%s7517_s1 + $0x60c] ss:$16 sps:$4 sm:$0xff]   ;;  %v5383_v5 = vld [vmem:[%s7517_s1 + $0x408] ss:$16 sps:$4 sm:$0xff]  }
 0x135   :  { %3571 = vmatprep.subr.bf16.mxu1 %v5328_v8  ;;  %v5386_v8 = vld [vmem:[%s7517_s1 + $0x608] ss:$16 sps:$4 sm:$0xff]  }
 0x137   :  { %3531 = vmatpush2.bf16.msra.mxu0 %v5323_v10  ;;  %v5391_v10 = vld [vmem:[%s7517_s1 + $0x5ec] ss:$16 sps:$4 sm:$0xff]  }
 0x138   :  { %3572 = vmatpush2.bf16.msra.mxu1 %v5326_v11  ;;  %3532 = vmatprep.subr.bf16.mxu0 %v5331_v12  ;;  %v5394_v11 = vld [vmem:[%s7517_s1 + $0x7ec] ss:$16 sps:$4 sm:$0xff]   ;;  %v5389_v12 = vld [vmem:[%s7517_s1 + $0x5e8] ss:$16 sps:$4 sm:$0xff]  }
 0x139   :  { %3573 = vmatprep.subr.bf16.mxu1 %v5334_v13  ;;  %v5392_v13 = vld [vmem:[%s7517_s1 + $0x7e8] ss:$16 sps:$4 sm:$0xff]  }
 0x13b   :  { %3533 = vmatpush2.bf16.msra.mxu0 %v5329_v14  ;;  %v5397_v14 = vld [vmem:[%s7517_s1 + $0x5cc] ss:$16 sps:$4 sm:$0xff]  }
 0x13c   :  { %3574 = vmatpush2.bf16.msra.mxu1 %v5332_v15  ;;  %3534 = vmatprep.subr.bf16.mxu0 %v5337_v47  ;;  %v5400_v15 = vld [vmem:[%s7517_s1 + $0x7cc] ss:$16 sps:$4 sm:$0xff]   ;;  %v5395_v47 = vld [vmem:[%s7517_s1 + $0x5c8] ss:$16 sps:$4 sm:$0xff]  }
 0x13d   :  { %3575 = vmatprep.subr.bf16.mxu1 %v5340_v51  ;;  %v5398_v51 = vld [vmem:[%s7517_s1 + $0x7c8] ss:$16 sps:$4 sm:$0xff]  }
 0x13f   :  { %3535 = vmatpush2.bf16.msra.mxu0 %v5335_v18  ;;  %v5403_v18 = vld [vmem:[%s7517_s1 + $0x5ac] ss:$16 sps:$4 sm:$0xff]  }
 0x140   :  { %3576 = vmatpush2.bf16.msra.mxu1 %v5338_v19  ;;  %3586 = vmatprep.subr.bf16.mxu0 %v5343_v20  ;;  %v5406_v19 = vld [vmem:[%s7517_s1 + $0x7ac] ss:$16 sps:$4 sm:$0xff]   ;;  %v5401_v20 = vld [vmem:[%s7517_s1 + $0x5a8] ss:$16 sps:$4 sm:$0xff]  }
 0x141   :  { %3627 = vmatprep.subr.bf16.mxu1 %v5346_v21  ;;  %v5404_v21 = vld [vmem:[%s7517_s1 + $0x7a8] ss:$16 sps:$4 sm:$0xff]  }
 0x142   :  { %v3292_v30 = vpop.f32.mrf.mxu0  ;;  %3537 = vmatmul.mubr.bf16.vlgmr.msra.gmra.mxu0 %v5906_v6  ;;  %v5355_v6 = vld [vmem:[%s7517_s1 + $0x4ac] ss:$16 sps:$4 sm:$0xff]  }
 0x143   :  { %v3333_v31 = vpop.f32.mrf.mxu1  ;;  %3578 = vmatmul.mubr.bf16.vlgmr.msra.gmra.mxu1 %v5908_v7  ;;  %v3293_v32 = vadd.f32 %v3292_v30, %v6596_v2  ;;  %3587 = vmatpush1.bf16.msra.mxu0 %v5341_v26  ;;  %v5358_v7 = vld [vmem:[%s7517_s1 + $0x6ac] ss:$16 sps:$4 sm:$0xff]  }
 0x144   :  { %3628 = vmatpush1.bf16.msra.mxu1 %v5344_v27  ;;  %v3294_v35 = vpop.f32.mrf.mxu0  ;;  %3588 = vmatprep.subr.bf16.mxu0 %v5349_v28  ;;  %v5409_v26 = vld [vmem:[%s7517_s1 + $0x58c] ss:$16 sps:$4 sm:$0xff]   ;;  %v5407_v28 = vld [vmem:[%s7517_s1 + $0x588] ss:$16 sps:$4 sm:$0xff]  }
 0x145   :  { %v3335_v22 = vpop.f32.mrf.mxu1  ;;  %3629 = vmatprep.subr.bf16.mxu1 %v5352_v29  ;;  %v6803_v2 = vadd.f32 %v3333_v31, %v3293_v32  ;;  %v3295_v23 = vadd.f32 %v3294_v35, %v6604_v9  ;;  %3618 = vmatprep.mubr.bf16.mxu0 %v6002_v36  ;;  %v5361_v36 = vld [vmem:[%s7517_s1 + $0x48c] ss:$16 sps:$4 sm:$0xff]   ;;  %v5410_v29 = vld [vmem:[%s7517_s1 + $0x788] ss:$16 sps:$4 sm:$0xff]  }
 0x146   :  { %3659 = vmatprep.mubr.bf16.mxu1 %v6006_v37  ;;  %v3296_v44 = vpop.f32.mrf.mxu0  ;;  %v5364_v37 = vld [vmem:[%s7517_s1 + $0x68c] ss:$16 sps:$4 sm:$0xff]   ;;  %v5413_v32 = vld [vmem:[%s7517_s1 + $0x568] ss:$16 sps:$4 sm:$0xff]  }
 0x147   :  { %v3337_v45 = vpop.f32.mrf.mxu1  ;;  %v6808_v46 = vadd.f32 %v3335_v22, %v3295_v23  ;;  %3589 = vmatpush1.bf16.msra.mxu0 %v5347_v33  ;;  %v5412_v27 = vld [vmem:[%s7517_s1 + $0x78c] ss:$16 sps:$4 sm:$0xff]   ;;  %v5416_v33 = vld [vmem:[%s7517_s1 + $0x768] ss:$16 sps:$4 sm:$0xff]  }
 0x148   :  { %3630 = vmatpush1.bf16.msra.mxu1 %v5350_v34  ;;  %v3297_v50 = vpop.f32.mrf.mxu0  ;;  %3590 = vmatprep.subr.bf16.mxu0 %v5355_v6  ;;  %v5415_v30 = vld [vmem:[%s7517_s1 + $0x56c] ss:$16 sps:$4 sm:$0xff]   ;;  %v5419_v22 = vld [vmem:[%s7517_s1 + $0x548] ss:$16 sps:$4 sm:$0xff]  }
 0x149   :  { %v3338_v9 = vpop.f32.mrf.mxu1  ;;  %3631 = vmatprep.subr.bf16.mxu1 %v5358_v7  ;;  %v5418_v31 = vld [vmem:[%s7517_s1 + $0x76c] ss:$16 sps:$4 sm:$0xff]   ;;  %v5422_v6 = vld [vmem:[%s7517_s1 + $0x748] ss:$16 sps:$4 sm:$0xff]  }
 0x14a   :  { %v5421_v34 = vld [vmem:[%s7517_s1 + $0x54c] ss:$16 sps:$4 sm:$0xff]   ;;  %v5425_v44 = vld [vmem:[%s7517_s1 + $0x528] ss:$16 sps:$4 sm:$0xff]  }
 0x14b   :  { %3591 = vmatpush1.bf16.msra.mxu0 %v5353_v48  ;;  %v5424_v35 = vld [vmem:[%s7517_s1 + $0x74c] ss:$16 sps:$4 sm:$0xff]   ;;  %v5428_v45 = vld [vmem:[%s7517_s1 + $0x728] ss:$16 sps:$4 sm:$0xff]  }
 0x14c   :  { %3632 = vmatpush1.bf16.msra.mxu1 %v5356_v49  ;;  %3592 = vmatprep.subr.bf16.mxu0 %v5361_v36  ;;  %v5427_v7 = vld [vmem:[%s7517_s1 + $0x52c] ss:$16 sps:$4 sm:$0xff]   ;;  %v5431_v50 = vld [vmem:[%s7517_s1 + $0x508] ss:$16 sps:$4 sm:$0xff]  }
 0x14d   :  { %3633 = vmatprep.subr.bf16.mxu1 %v5364_v37  ;;  %v5430_v23 = vld [vmem:[%s7517_s1 + $0x72c] ss:$16 sps:$4 sm:$0xff]   ;;  %v5434_v9 = vld [vmem:[%s7517_s1 + $0x708] ss:$16 sps:$4 sm:$0xff]  }
 0x14e   :  { %v5433_v48 = vld [vmem:[%s7517_s1 + $0x50c] ss:$16 sps:$4 sm:$0xff]  }
 0x14f   :  { %3593 = vmatpush1.bf16.msra.mxu0 %v5359_v52  ;;  %v5436_v49 = vld [vmem:[%s7517_s1 + $0x70c] ss:$16 sps:$4 sm:$0xff]   ;;  %v5437_v52 = vld [vmem:[%s7517_s1 + $0x8e8] ss:$16 sps:$4 sm:$0xff]  }
 0x150   :  { %3634 = vmatpush1.bf16.msra.mxu1 %v5362_v53  ;;  %3594 = vmatprep.subr.bf16.mxu0 %v5367_v54  ;;  %v5439_v36 = vld [vmem:[%s7517_s1 + $0x8ec] ss:$16 sps:$4 sm:$0xff]   ;;  %v5440_v53 = vld [vmem:[%s7517_s1 + $0xae8] ss:$16 sps:$4 sm:$0xff]  }
 0x151   :  { %3635 = vmatprep.subr.bf16.mxu1 %v5370_v55  ;;  %v5442_v37 = vld [vmem:[%s7517_s1 + $0xaec] ss:$16 sps:$4 sm:$0xff]  }
 0x152   :  { %v5445_v54 = vld [vmem:[%s7517_s1 + $0x8cc] ss:$16 sps:$4 sm:$0xff]  }
 0x153   :  { %3595 = vmatpush1.bf16.msra.mxu0 %v5365_v56  ;;  %v5448_v55 = vld [vmem:[%s7517_s1 + $0xacc] ss:$16 sps:$4 sm:$0xff]   ;;  %v5443_v56 = vld [vmem:[%s7517_s1 + $0x8c8] ss:$16 sps:$4 sm:$0xff]  }
 0x154   :  { %3636 = vmatpush1.bf16.msra.mxu1 %v5368_v57  ;;  %3596 = vmatprep.subr.bf16.mxu0 %v5373_v60  ;;  %v5446_v57 = vld [vmem:[%s7517_s1 + $0xac8] ss:$16 sps:$4 sm:$0xff]  }
 0x155   :  { %3637 = vmatprep.subr.bf16.mxu1 %v5376_v61 }
 0x157   :  { %3597 = vmatpush1.bf16.msra.mxu0 %v5371_v62  ;;  %v5451_v62 = vld [vmem:[%s7517_s1 + $0x8ac] ss:$16 sps:$4 sm:$0xff]  }
 0x158   :  { %3638 = vmatpush1.bf16.msra.mxu1 %v5374_v40  ;;  %3598 = vmatprep.subr.bf16.mxu0 %v5379_v41 }
 0x159   :  { %3639 = vmatprep.subr.bf16.mxu1 %v5382_v63  ;;  %v5454_v63 = vld [vmem:[%s7517_s1 + $0xaac] ss:$16 sps:$4 sm:$0xff]  }
 0x15b   :  { %3599 = vmatpush1.bf16.msra.mxu0 %v5377_v0 }
 0x15c   :  { %3640 = vmatpush1.bf16.msra.mxu1 %v5380_v1  ;;  %3600 = vmatprep.subr.bf16.mxu0 %v5385_v3 }
 0x15d   :  { %3641 = vmatprep.subr.bf16.mxu1 %v5388_v4 }
 0x15f   :  { %3601 = vmatpush1.bf16.msra.mxu0 %v5383_v5  ;;  %v5457_v5 = vld [vmem:[%s7517_s1 + $0x88c] ss:$16 sps:$4 sm:$0xff]  }
 0x160   :  { %3642 = vmatpush1.bf16.msra.mxu1 %v5386_v8  ;;  %3602 = vmatprep.subr.bf16.mxu0 %v5391_v10  ;;  %v5460_v8 = vld [vmem:[%s7517_s1 + $0xa8c] ss:$16 sps:$4 sm:$0xff]  }
 0x161   :  { %3643 = vmatprep.subr.bf16.mxu1 %v5394_v11  ;;  %v5463_v10 = vld [vmem:[%s7517_s1 + $0x86c] ss:$16 sps:$4 sm:$0xff]  }
 0x162   :  { %v5466_v11 = vld [vmem:[%s7517_s1 + $0xa6c] ss:$16 sps:$4 sm:$0xff]  }
 0x163   :  { %3603 = vmatpush2.bf16.msra.mxu0 %v5389_v12  ;;  %v5461_v12 = vld [vmem:[%s7517_s1 + $0x868] ss:$16 sps:$4 sm:$0xff]  }
 0x164   :  { %3644 = vmatpush2.bf16.msra.mxu1 %v5392_v13  ;;  %3604 = vmatprep.subr.bf16.mxu0 %v5397_v14  ;;  %v5464_v13 = vld [vmem:[%s7517_s1 + $0xa68] ss:$16 sps:$4 sm:$0xff]   ;;  %v5469_v14 = vld [vmem:[%s7517_s1 + $0x84c] ss:$16 sps:$4 sm:$0xff]  }
 0x165   :  { %3645 = vmatprep.subr.bf16.mxu1 %v5400_v15  ;;  %v5472_v15 = vld [vmem:[%s7517_s1 + $0xa4c] ss:$16 sps:$4 sm:$0xff]  }
 0x167   :  { %3605 = vmatpush2.bf16.msra.mxu0 %v5395_v47  ;;  %v5467_v47 = vld [vmem:[%s7517_s1 + $0x848] ss:$16 sps:$4 sm:$0xff]  }
 0x168   :  { %3646 = vmatpush2.bf16.msra.mxu1 %v5398_v51  ;;  %3606 = vmatprep.subr.bf16.mxu0 %v5403_v18  ;;  %v5470_v51 = vld [vmem:[%s7517_s1 + $0xa48] ss:$16 sps:$4 sm:$0xff]   ;;  %v5475_v18 = vld [vmem:[%s7517_s1 + $0x82c] ss:$16 sps:$4 sm:$0xff]  }
 0x169   :  { %3647 = vmatprep.subr.bf16.mxu1 %v5406_v19  ;;  %v5478_v19 = vld [vmem:[%s7517_s1 + $0xa2c] ss:$16 sps:$4 sm:$0xff]  }
 0x16b   :  { %3607 = vmatpush2.bf16.msra.mxu0 %v5401_v20  ;;  %v5473_v20 = vld [vmem:[%s7517_s1 + $0x828] ss:$16 sps:$4 sm:$0xff]  }
 0x16c   :  { %3648 = vmatpush2.bf16.msra.mxu1 %v5404_v21  ;;  %3608 = vmatprep.subr.bf16.mxu0 %v5409_v26  ;;  %v5476_v21 = vld [vmem:[%s7517_s1 + $0xa28] ss:$16 sps:$4 sm:$0xff]   ;;  %v5481_v26 = vld [vmem:[%s7517_s1 + $0x80c] ss:$16 sps:$4 sm:$0xff]  }
 0x16d   :  { %3649 = vmatprep.subr.bf16.mxu1 %v5412_v27  ;;  %v5484_v27 = vld [vmem:[%s7517_s1 + $0xa0c] ss:$16 sps:$4 sm:$0xff]  }
 0x16f   :  { %3609 = vmatpush2.bf16.msra.mxu0 %v5407_v28  ;;  %v5479_v28 = vld [vmem:[%s7517_s1 + $0x808] ss:$16 sps:$4 sm:$0xff]  }
 0x170   :  { %3650 = vmatpush2.bf16.msra.mxu1 %v5410_v29  ;;  %3610 = vmatprep.subr.bf16.mxu0 %v5415_v30  ;;  %v5482_v29 = vld [vmem:[%s7517_s1 + $0xa08] ss:$16 sps:$4 sm:$0xff]   ;;  %v5487_v30 = vld [vmem:[%s7517_s1 + $0x9ec] ss:$16 sps:$4 sm:$0xff]  }
 0x171   :  { %3651 = vmatprep.subr.bf16.mxu1 %v5418_v31  ;;  %v5490_v31 = vld [vmem:[%s7517_s1 + $0xbec] ss:$16 sps:$4 sm:$0xff]  }
 0x173   :  { %3611 = vmatpush2.bf16.msra.mxu0 %v5413_v32  ;;  %v5485_v32 = vld [vmem:[%s7517_s1 + $0x9e8] ss:$16 sps:$4 sm:$0xff]  }
 0x174   :  { %3652 = vmatpush2.bf16.msra.mxu1 %v5416_v33  ;;  %3612 = vmatprep.subr.bf16.mxu0 %v5421_v34  ;;  %v5488_v33 = vld [vmem:[%s7517_s1 + $0xbe8] ss:$16 sps:$4 sm:$0xff]   ;;  %v5493_v34 = vld [vmem:[%s7517_s1 + $0x9cc] ss:$16 sps:$4 sm:$0xff]  }
 0x175   :  { %3653 = vmatprep.subr.bf16.mxu1 %v5424_v35  ;;  %v5496_v35 = vld [vmem:[%s7517_s1 + $0xbcc] ss:$16 sps:$4 sm:$0xff]  }
 0x177   :  { %3613 = vmatpush2.bf16.msra.mxu0 %v5419_v22  ;;  %v5491_v22 = vld [vmem:[%s7517_s1 + $0x9c8] ss:$16 sps:$4 sm:$0xff]  }
 0x178   :  { %3654 = vmatpush2.bf16.msra.mxu1 %v5422_v6  ;;  %3614 = vmatprep.subr.bf16.mxu0 %v5427_v7  ;;  %v5494_v6 = vld [vmem:[%s7517_s1 + $0xbc8] ss:$16 sps:$4 sm:$0xff]   ;;  %v5499_v7 = vld [vmem:[%s7517_s1 + $0x9ac] ss:$16 sps:$4 sm:$0xff]  }
 0x179   :  { %3655 = vmatprep.subr.bf16.mxu1 %v5430_v23  ;;  %v5502_v23 = vld [vmem:[%s7517_s1 + $0xbac] ss:$16 sps:$4 sm:$0xff]  }
 0x17b   :  { %3615 = vmatpush2.bf16.msra.mxu0 %v5425_v44  ;;  %v5497_v44 = vld [vmem:[%s7517_s1 + $0x9a8] ss:$16 sps:$4 sm:$0xff]  }
 0x17c   :  { %3656 = vmatpush2.bf16.msra.mxu1 %v5428_v45  ;;  %3616 = vmatprep.subr.bf16.mxu0 %v5433_v48  ;;  %v5500_v45 = vld [vmem:[%s7517_s1 + $0xba8] ss:$16 sps:$4 sm:$0xff]   ;;  %v5505_v48 = vld [vmem:[%s7517_s1 + $0x98c] ss:$16 sps:$4 sm:$0xff]  }
 0x17d   :  { %3657 = vmatprep.subr.bf16.mxu1 %v5436_v49  ;;  %v5508_v49 = vld [vmem:[%s7517_s1 + $0xb8c] ss:$16 sps:$4 sm:$0xff]  }
 0x17f   :  { %3617 = vmatpush2.bf16.msra.mxu0 %v5431_v50  ;;  %v5503_v50 = vld [vmem:[%s7517_s1 + $0x988] ss:$16 sps:$4 sm:$0xff]  }
 0x180   :  { %3658 = vmatpush2.bf16.msra.mxu1 %v5434_v9  ;;  %3668 = vmatprep.subr.bf16.mxu0 %v5439_v36  ;;  %v5506_v9 = vld [vmem:[%s7517_s1 + $0xb88] ss:$16 sps:$4 sm:$0xff]   ;;  %v5511_v36 = vld [vmem:[%s7517_s1 + $0x96c] ss:$16 sps:$4 sm:$0xff]  }
 0x181   :  { %3709 = vmatprep.subr.bf16.mxu1 %v5442_v37  ;;  %v5514_v37 = vld [vmem:[%s7517_s1 + $0xb6c] ss:$16 sps:$4 sm:$0xff]  }
 0x182   :  { %v6996_v60 = vpop.f32.mrf.mxu0  ;;  %3619 = vmatmul.mubr.bf16.vlgmr.msra.gmra.mxu0 %v6126_v16  ;;  %v5449_v16 = vld [vmem:[%s7517_s1 + $0x8a8] ss:$16 sps:$4 sm:$0xff]  }
 0x183   :  { %v6998_v61 = vpop.f32.mrf.mxu1  ;;  %3660 = vmatmul.mubr.bf16.vlgmr.msra.gmra.mxu1 %v6130_v17  ;;  %3669 = vmatpush1.bf16.msra.mxu0 %v5437_v52  ;;  %v5452_v17 = vld [vmem:[%s7517_s1 + $0xaa8] ss:$16 sps:$4 sm:$0xff]  }
 0x184   :  { %3710 = vmatpush1.bf16.msra.mxu1 %v5440_v53  ;;  %v7005_v40 = vpop.f32.mrf.mxu0  ;;  %3670 = vmatprep.subr.bf16.mxu0 %v5445_v54  ;;  %v5509_v52 = vld [vmem:[%s7517_s1 + $0x968] ss:$16 sps:$4 sm:$0xff]   ;;  %v5517_v54 = vld [vmem:[%s7517_s1 + $0x94c] ss:$16 sps:$4 sm:$0xff]  }
 0x185   :  { %v7007_v41 = vpop.f32.mrf.mxu1  ;;  %3711 = vmatprep.subr.bf16.mxu1 %v5448_v55  ;;  %3700 = vmatprep.mubr.bf16.mxu0 %v6156_v24  ;;  %v5455_v24 = vld [vmem:[%s7517_s1 + $0x888] ss:$16 sps:$4 sm:$0xff]   ;;  %v5520_v55 = vld [vmem:[%s7517_s1 + $0xb4c] ss:$16 sps:$4 sm:$0xff]  }
 0x186   :  { %3741 = vmatprep.mubr.bf16.mxu1 %v6160_v25  ;;  %v3378_v0 = vpop.f32.mrf.mxu0  ;;  %v5458_v25 = vld [vmem:[%s7517_s1 + $0xa88] ss:$16 sps:$4 sm:$0xff]  }
 0x187   :  { %v3419_v1 = vpop.f32.mrf.mxu1  ;;  %3671 = vmatpush1.bf16.msra.mxu0 %v5443_v56  ;;  %v5512_v53 = vld [vmem:[%s7517_s1 + $0xb68] ss:$16 sps:$4 sm:$0xff]   ;;  %v5529_v0 = vld [vmem:[%s7517_s1 + $0x90c] ss:$16 sps:$4 sm:$0xff]  }
 0x188   :  { %3712 = vmatpush1.bf16.msra.mxu1 %v5446_v57  ;;  %v3379_v3 = vpop.f32.mrf.mxu0  ;;  %3672 = vmatprep.subr.bf16.mxu0 %v5451_v62  ;;  %v5515_v56 = vld [vmem:[%s7517_s1 + $0x948] ss:$16 sps:$4 sm:$0xff]   ;;  %v5523_v62 = vld [vmem:[%s7517_s1 + $0x92c] ss:$16 sps:$4 sm:$0xff]  }
 0x189   :  { %v3420_v4 = vpop.f32.mrf.mxu1  ;;  %3713 = vmatprep.subr.bf16.mxu1 %v5454_v63  ;;  %v5518_v57 = vld [vmem:[%s7517_s1 + $0xb48] ss:$16 sps:$4 sm:$0xff]   ;;  %v5526_v63 = vld [vmem:[%s7517_s1 + $0xb2c] ss:$16 sps:$4 sm:$0xff]   ;;  %v3849_v3 = vlaneseq }
 0x18a   :  { %v5532_v1 = vld [vmem:[%s7517_s1 + $0xb0c] ss:$16 sps:$4 sm:$0xff]   ;;  %v5527_v4 = vld [vmem:[%s7517_s1 + $0x908] ss:$16 sps:$4 sm:$0xff]  }
 0x18b   :  { %3673 = vmatpush1.bf16.msra.mxu0 %v5449_v16  ;;  %v5521_v16 = vld [vmem:[%s7517_s1 + $0x928] ss:$16 sps:$4 sm:$0xff]  }
 0x18c   :  { %3714 = vmatpush1.bf16.msra.mxu1 %v5452_v17  ;;  %3674 = vmatprep.subr.bf16.mxu0 %v5457_v5  ;;  %v5524_v17 = vld [vmem:[%s7517_s1 + $0xb28] ss:$16 sps:$4 sm:$0xff]  }
 0x18d   :  { %3715 = vmatprep.subr.bf16.mxu1 %v5460_v8  ;;  %v5530_v5 = vld [vmem:[%s7517_s1 + $0xb08] ss:$16 sps:$4 sm:$0xff]   ;;  %v5535_v8 = vld [vmem:[%s7517_s1 + $0xcec] ss:$16 sps:$4 sm:$0xff]  }
 0x18f   :  { %3675 = vmatpush1.bf16.msra.mxu0 %v5455_v24  ;;  %v5538_v24 = vld [vmem:[%s7517_s1 + $0xeec] ss:$16 sps:$4 sm:$0xff]  }
 0x190   :  { %3716 = vmatpush1.bf16.msra.mxu1 %v5458_v25  ;;  %3676 = vmatprep.subr.bf16.mxu0 %v5463_v10  ;;  %v3375_v25 = vadd.f32 %v6996_v60, %v6803_v2  ;;  %v7184_v10 = vshrl.u32 %v3849_v3, 7  ;;  %v5541_v2 = vld [vmem:[%s7517_s1 + $0xccc] ss:$16 sps:$4 sm:$0xff]   ;;  %v5584_v3 = vld [vmem:[%s7517_s1 + $0xfe8] ss:$16 sps:$4 sm:$0xff]  }
 0x191   :  { %3717 = vmatprep.subr.bf16.mxu1 %v5466_v11  ;;  %v3377_v11 = vadd.f32 %v7005_v40, %v6808_v46  ;;  %v5544_v46 = vld [vmem:[%s7517_s1 + $0xecc] ss:$16 sps:$4 sm:$0xff]  }
 0x192   :  { %v3416_v60 = vadd.f32 %v6998_v61, %v3375_v25  ;;  %v3851_v40 = vsub.s32 0, %v7184_v10  ;;  %v5539_v61 = vld [vmem:[%s7517_s1 + $0xcc8] ss:$16 sps:$4 sm:$0xff]   ;;  %v5595_v25 = vld [vmem:[%s7517_s1 + $0xdac] ss:$16 sps:$4 sm:$0xff]  }
 0x193   :  { %3677 = vmatpush1.bf16.msra.mxu0 %v5461_v12  ;;  %v5533_v12 = vld [vmem:[%s7517_s1 + $0xce8] ss:$16 sps:$4 sm:$0xff]  }
 0x194   :  { %3718 = vmatpush1.bf16.msra.mxu1 %v5464_v13  ;;  %3678 = vmatprep.subr.bf16.mxu0 %v5469_v14  ;;  %v5536_v13 = vld [vmem:[%s7517_s1 + $0xee8] ss:$16 sps:$4 sm:$0xff]  }
 0x195   :  { %3719 = vmatprep.subr.bf16.mxu1 %v5472_v15 }
 0x197   :  { %3679 = vmatpush1.bf16.msra.mxu0 %v5467_v47  ;;  %v7207_v47 = vld [vmem:[%s7520_s2] sm:$0xf] }
 0x198   :  { %3720 = vmatpush1.bf16.msra.mxu1 %v5470_v51  ;;  %3680 = vmatprep.subr.bf16.mxu0 %v5475_v18  ;;  %v3418_v51 = vadd.f32 %v7007_v41, %v3377_v11  ;;  %v5547_v41 = vld [vmem:[%s7517_s1 + $0xcac] ss:$16 sps:$4 sm:$0xff]  }
 0x199   :  { %3721 = vmatprep.subr.bf16.mxu1 %v5478_v19  ;;  %v5598_v11 = vld [vmem:[%s7517_s1 + $0xfac] ss:$16 sps:$4 sm:$0xff]  }
 0x19b   :  { %3681 = vmatpush1.bf16.msra.mxu0 %v5473_v20 }
 0x19c   :  { %3722 = vmatpush1.bf16.msra.mxu1 %v5476_v21  ;;  %3682 = vmatprep.subr.bf16.mxu0 %v5481_v26  ;;  %v5550_v21 = vld [vmem:[%s7517_s1 + $0xeac] ss:$16 sps:$4 sm:$0xff]  }
 0x19d   :  { %3723 = vmatprep.subr.bf16.mxu1 %v5484_v27 }
 0x19f   :  { %3683 = vmatpush1.bf16.msra.mxu0 %v5479_v28  ;;  %v3852_v28 = vrot.slane %v7207_v47, %v3851_v40  ;;  %v5602_v40 = vld [vmem:[%s7517_s1 + $0xf88] ss:$16 sps:$4 sm:$0xff]  }
 0x1a0   :  { %3724 = vmatpush1.bf16.msra.mxu1 %v5482_v29  ;;  %3684 = vmatprep.subr.bf16.mxu0 %v5487_v30 }
 0x1a1   :  { %3725 = vmatprep.subr.bf16.mxu1 %v5490_v31 }
 0x1a3   :  { %3685 = vmatpush2.bf16.msra.mxu0 %v5485_v32  ;;  %v5545_v32 = vld [vmem:[%s7517_s1 + $0xca8] ss:$16 sps:$4 sm:$0xff]  }
 0x1a4   :  { %3726 = vmatpush2.bf16.msra.mxu1 %v5488_v33  ;;  %3686 = vmatprep.subr.bf16.mxu0 %v5493_v34  ;;  %v5548_v33 = vld [vmem:[%s7517_s1 + $0xea8] ss:$16 sps:$4 sm:$0xff]  }
 0x1a5   :  { %3727 = vmatprep.subr.bf16.mxu1 %v5496_v35 }
 0x1a7   :  { %3687 = vmatpush2.bf16.msra.mxu0 %v5491_v22  ;;  %v5556_v22 = vld [vmem:[%s7517_s1 + $0xe8c] ss:$16 sps:$4 sm:$0xff]  }
 0x1a8   :  { %3728 = vmatpush2.bf16.msra.mxu1 %v5494_v6  ;;  %3688 = vmatprep.subr.bf16.mxu0 %v5499_v7  ;;  %v5551_v7 = vld [vmem:[%s7517_s1 + $0xc88] ss:$16 sps:$4 sm:$0xff]  }
 0x1a9   :  { %3729 = vmatprep.subr.bf16.mxu1 %v5502_v23  ;;  %v5554_v23 = vld [vmem:[%s7517_s1 + $0xe88] ss:$16 sps:$4 sm:$0xff]  }
 0x1ab   :  { %3689 = vmatpush2.bf16.msra.mxu0 %v5497_v44 }
 0x1ac   :  { %3730 = vmatpush2.bf16.msra.mxu1 %v5500_v45  ;;  %3690 = vmatprep.subr.bf16.mxu0 %v5505_v48  ;;  %v5559_v45 = vld [vmem:[%s7517_s1 + $0xc6c] ss:$16 sps:$4 sm:$0xff]  }
 0x1ad   :  { %3731 = vmatprep.subr.bf16.mxu1 %v5508_v49  ;;  %v5562_v48 = vld [vmem:[%s7517_s1 + $0xe6c] ss:$16 sps:$4 sm:$0xff]   ;;  %v5557_v49 = vld [vmem:[%s7517_s1 + $0xc68] ss:$16 sps:$4 sm:$0xff]  }
 0x1af   :  { %3691 = vmatpush2.bf16.msra.mxu0 %v5503_v50  ;;  %v5560_v50 = vld [vmem:[%s7517_s1 + $0xe68] ss:$16 sps:$4 sm:$0xff]  }
 0x1b0   :  { %3732 = vmatpush2.bf16.msra.mxu1 %v5506_v9  ;;  %3692 = vmatprep.subr.bf16.mxu0 %v5511_v36  ;;  %v5565_v9 = vld [vmem:[%s7517_s1 + $0xc4c] ss:$16 sps:$4 sm:$0xff]  }
 0x1b1   :  { %3733 = vmatprep.subr.bf16.mxu1 %v5514_v37  ;;  %v5568_v36 = vld [vmem:[%s7517_s1 + $0xe4c] ss:$16 sps:$4 sm:$0xff]   ;;  %v5563_v37 = vld [vmem:[%s7517_s1 + $0xc48] ss:$16 sps:$4 sm:$0xff]  }
 0x1b3   :  { %3693 = vmatpush2.bf16.msra.mxu0 %v5509_v52  ;;  %v5566_v52 = vld [vmem:[%s7517_s1 + $0xe48] ss:$16 sps:$4 sm:$0xff]  }
 0x1b4   :  { %3734 = vmatpush2.bf16.msra.mxu1 %v5512_v53  ;;  %3694 = vmatprep.subr.bf16.mxu0 %v5517_v54  ;;  %v5571_v53 = vld [vmem:[%s7517_s1 + $0xc2c] ss:$16 sps:$4 sm:$0xff]  }
 0x1b5   :  { %3735 = vmatprep.subr.bf16.mxu1 %v5520_v55  ;;  %v5574_v54 = vld [vmem:[%s7517_s1 + $0xe2c] ss:$16 sps:$4 sm:$0xff]   ;;  %v5569_v55 = vld [vmem:[%s7517_s1 + $0xc28] ss:$16 sps:$4 sm:$0xff]  }
 0x1b7   :  { %3695 = vmatpush2.bf16.msra.mxu0 %v5515_v56  ;;  %v5572_v56 = vld [vmem:[%s7517_s1 + $0xe28] ss:$16 sps:$4 sm:$0xff]  }
 0x1b8   :  { %3736 = vmatpush2.bf16.msra.mxu1 %v5518_v57  ;;  %3696 = vmatprep.subr.bf16.mxu0 %v5523_v62  ;;  %v5577_v57 = vld [vmem:[%s7517_s1 + $0xc0c] ss:$16 sps:$4 sm:$0xff]  }
 0x1b9   :  { %3737 = vmatprep.subr.bf16.mxu1 %v5526_v63  ;;  %v5580_v62 = vld [vmem:[%s7517_s1 + $0xe0c] ss:$16 sps:$4 sm:$0xff]   ;;  %v5575_v63 = vld [vmem:[%s7517_s1 + $0xc08] ss:$16 sps:$4 sm:$0xff]  }
 0x1bb   :  { %3697 = vmatpush2.bf16.msra.mxu0 %v5521_v16  ;;  %v5578_v16 = vld [vmem:[%s7517_s1 + $0xe08] ss:$16 sps:$4 sm:$0xff]  }
 0x1bc   :  { %3738 = vmatpush2.bf16.msra.mxu1 %v5524_v17  ;;  %3698 = vmatprep.subr.bf16.mxu0 %v5529_v0  ;;  %v5583_v17 = vld [vmem:[%s7517_s1 + $0xdec] ss:$16 sps:$4 sm:$0xff]  }
 0x1bd   :  { %3739 = vmatprep.subr.bf16.mxu1 %v5532_v1  ;;  %v5586_v0 = vld [vmem:[%s7517_s1 + $0xfec] ss:$16 sps:$4 sm:$0xff]   ;;  %v5581_v1 = vld [vmem:[%s7517_s1 + $0xde8] ss:$16 sps:$4 sm:$0xff]  }
 0x1bf   :  { %3699 = vmatpush2.bf16.msra.mxu0 %v5527_v4  ;;  %v5589_v4 = vld [vmem:[%s7517_s1 + $0xdcc] ss:$16 sps:$4 sm:$0xff]  }
 0x1c0   :  { %3740 = vmatpush2.bf16.msra.mxu1 %v5530_v5  ;;  %3750 = vmatprep.subr.bf16.mxu0 %v5535_v8  ;;  %v5592_v5 = vld [vmem:[%s7517_s1 + $0xfcc] ss:$16 sps:$4 sm:$0xff]   ;;  %v5587_v8 = vld [vmem:[%s7517_s1 + $0xdc8] ss:$16 sps:$4 sm:$0xff]  }
 0x1c1   :  { %3791 = vmatprep.subr.bf16.mxu1 %v5538_v24  ;;  %v5590_v24 = vld [vmem:[%s7517_s1 + $0xfc8] ss:$16 sps:$4 sm:$0xff]  }
 0x1c2   :  { %v3456_v14 = vpop.f32.mrf.mxu0  ;;  %3701 = vmatmul.mubr.bf16.vlgmr.msra.gmra.mxu0 %v6354_v38  ;;  %v5542_v38 = vld [vmem:[%s7517_s1 + $0xec8] ss:$16 sps:$4 sm:$0xff]  }
 0x1c3   :  { %v3497_v15 = vpop.f32.mrf.mxu1  ;;  %3742 = vmatmul.mubr.bf16.vlgmr.msra.gmra.mxu1 %v6358_v39  ;;  %v3457_v18 = vadd.f32 %v3456_v14, %v3416_v60  ;;  %3751 = vmatpush1.bf16.msra.mxu0 %v5533_v12  ;;  %v3855_v39 = vsub.s32 1, %v7184_v10  ;;  %v5593_v12 = vld [vmem:[%s7517_s1 + $0xda8] ss:$16 sps:$4 sm:$0xff]   ;;  %v5607_v14 = vld [vmem:[%s7517_s1 + $0xd6c] ss:$16 sps:$4 sm:$0xff]  }
 0x1c4   :  { %3792 = vmatpush1.bf16.msra.mxu1 %v5536_v13  ;;  %v3458_v19 = vpop.f32.mrf.mxu0  ;;  %3752 = vmatprep.subr.bf16.mxu0 %v5541_v2  ;;  %v5596_v13 = vld [vmem:[%s7517_s1 + $0xfa8] ss:$16 sps:$4 sm:$0xff]   ;;  %v5601_v2 = vld [vmem:[%s7517_s1 + $0xd8c] ss:$16 sps:$4 sm:$0xff]  }
 0x1c5   :  { %v3499_v20 = vpop.f32.mrf.mxu1  ;;  %3793 = vmatprep.subr.bf16.mxu1 %v5544_v46  ;;  %v3498_v26 = vadd.f32 %v3497_v15, %v3457_v18  ;;  %v3459_v27 = vadd.f32 %v3458_v19, %v3418_v51  ;;  %3782 = vmatprep.mubr.bf16.mxu0 %v6378_v42  ;;  %v3856_v34 = vrot.slane %v7207_v47, %v3855_v39  ;;  %v5604_v46 = vld [vmem:[%s7517_s1 + $0xf8c] ss:$16 sps:$4 sm:$0xff]   ;;  %v5599_v60 = vld [vmem:[%s7517_s1 + $0xd88] ss:$16 sps:$4 sm:$0xff]  }
 0x1c6   :  { %3823 = vmatprep.mubr.bf16.mxu1 %v6382_v43  ;;  %v3460_v29 = vpop.f32.mrf.mxu0  ;;  %v5553_v43 = vld [vmem:[%s7517_s1 + $0xc8c] ss:$16 sps:$4 sm:$0xff]   ;;  %v5605_v51 = vld [vmem:[%s7517_s1 + $0xd68] ss:$16 sps:$4 sm:$0xff]  }
 0x1c7   :  { %v3501_v30 = vpop.f32.mrf.mxu1  ;;  %v3500_v31 = vadd.f32 %v3499_v20, %v3459_v27  ;;  %3753 = vmatpush1.bf16.msra.mxu0 %v5539_v61  ;;  %v7239_v6 = vadd.f32 %v3852_v28, %v3498_v26  ;;  %v5610_v15 = vld [vmem:[%s7517_s1 + $0xf6c] ss:$16 sps:$4 sm:$0xff]   ;;  %v5608_v18 = vld [vmem:[%s7517_s1 + $0xf68] ss:$16 sps:$4 sm:$0xff]  }
 0x1c8   :  { %3794 = vmatpush1.bf16.msra.mxu1 %v5542_v38  ;;  %v3461_v42 = vpop.f32.mrf.mxu0  ;;  %3754 = vmatprep.subr.bf16.mxu0 %v5547_v41  ;;  %v5613_v61 = vld [vmem:[%s7517_s1 + $0xd4c] ss:$16 sps:$4 sm:$0xff]   ;;  %v5611_v39 = vld [vmem:[%s7517_s1 + $0xd48] ss:$16 sps:$4 sm:$0xff]  }
 0x1c9   :  { %v3502_v35 = vpop.f32.mrf.mxu1  ;;  %3795 = vmatprep.subr.bf16.mxu1 %v5550_v21  ;;  %v7247_v44 = vadd.f32 %v3856_v34, %v3500_v31  ;;  %3873 = vst [vmem:[%s7521_s6] sm:$0xff] %v7239_v6  ;;  %v5616_v38 = vld [vmem:[%s7517_s1 + $0xf4c] ss:$16 sps:$4 sm:$0xff]   ;;  %v5614_v19 = vld [vmem:[%s7517_s1 + $0xf48] ss:$16 sps:$4 sm:$0xff]   ;;  %v5631_v34 = vld [vmem:[%s7519_s3 + $0x70] sm:$0xff]  }
 0x1ca   :  { %v5619_v20 = vld [vmem:[%s7517_s1 + $0xd2c] ss:$16 sps:$4 sm:$0xff]   ;;  %v5617_v21 = vld [vmem:[%s7517_s1 + $0xd28] ss:$16 sps:$4 sm:$0xff]  }
 0x1cb   :  { %3755 = vmatpush1.bf16.msra.mxu0 %v5545_v32  ;;  %3874 = vst [vmem:[%s7521_s6 + $0x8] sm:$0xff] %v7247_v44  ;;  %v5622_v41 = vld [vmem:[%s7517_s1 + $0xf2c] ss:$16 sps:$4 sm:$0xff]   ;;  %v5620_v26 = vld [vmem:[%s7517_s1 + $0xf28] ss:$16 sps:$4 sm:$0xff]   ;;  %v3878_v32 = vmax.f32 %v7247_v44, 0.0 }
 0x1cc   :  { %3796 = vmatpush1.bf16.msra.mxu1 %v5548_v33  ;;  %3756 = vmatprep.subr.bf16.mxu0 %v5553_v43  ;;  %v5625_v27 = vld [vmem:[%s7517_s1 + $0xd0c] ss:$16 sps:$4 sm:$0xff]   ;;  %v5623_v29 = vld [vmem:[%s7517_s1 + $0xd08] ss:$16 sps:$4 sm:$0xff]  }
 0x1cd   :  { %3797 = vmatprep.subr.bf16.mxu1 %v5556_v22  ;;  %v5628_v28 = vld [vmem:[%s7517_s1 + $0xf0c] ss:$16 sps:$4 sm:$0xff]   ;;  %v5626_v30 = vld [vmem:[%s7517_s1 + $0xf08] ss:$16 sps:$4 sm:$0xff]   ;;  %v3882_v42 = vpack.c.bf16 %v3878_v32, %v3878_v32 }
 0x1ce   :  { %v5629_v31 = vld [vmem:[%s7519_s3 + $0x78] sm:$0xff]  }
 0x1cf   :  { %3757 = vmatpush1.bf16.msra.mxu0 %v5551_v7  ;;  %v5630_v33 = vld [vmem:[%s7519_s3 + $0x38] sm:$0xff]   ;;  %v5632_v7 = vld [vmem:[%s7519_s3 + $0x30] sm:$0xff]  }
 0x1d0   :  { %3798 = vmatpush1.bf16.msra.mxu1 %v5554_v23  ;;  %3758 = vmatprep.subr.bf16.mxu0 %v5559_v45  ;;  %v5633_v45 = vld [vmem:[%s7519_s3 + $0x68] sm:$0xff]  }
 0x1d1   :  { %3799 = vmatprep.subr.bf16.mxu1 %v5562_v48 }
 0x1d3   :  { %3759 = vmatpush1.bf16.msra.mxu0 %v5557_v49 }
 0x1d4   :  { %3800 = vmatpush1.bf16.msra.mxu1 %v5560_v50  ;;  %3760 = vmatprep.subr.bf16.mxu0 %v5565_v9 }
 0x1d5   :  { %3801 = vmatprep.subr.bf16.mxu1 %v5568_v36 }
 0x1d7   :  { %3761 = vmatpush1.bf16.msra.mxu0 %v5563_v37  ;;  %v5645_v37 = vld [vmem:[%s7519_s3 + $0xf8] sm:$0xff]  }
 0x1d8   :  { %3802 = vmatpush1.bf16.msra.mxu1 %v5566_v52  ;;  %3762 = vmatprep.subr.bf16.mxu0 %v5571_v53  ;;  %v5646_v52 = vld [vmem:[%s7519_s3 + $0xb8] sm:$0xff]   ;;  %v5647_v53 = vld [vmem:[%s7519_s3 + $0xf0] sm:$0xff]  }
 0x1d9   :  { %3803 = vmatprep.subr.bf16.mxu1 %v5574_v54  ;;  %v5636_v54 = vld [vmem:[%s7519_s3 + $0x20] sm:$0xff]  }
 0x1db   :  { %3763 = vmatpush1.bf16.msra.mxu0 %v5569_v55  ;;  %v5648_v55 = vld [vmem:[%s7519_s3 + $0xb0] sm:$0xff]  }
 0x1dc   :  { %3804 = vmatpush1.bf16.msra.mxu1 %v5572_v56  ;;  %3764 = vmatprep.subr.bf16.mxu0 %v5577_v57  ;;  %v5637_v56 = vld [vmem:[%s7519_s3 + $0x58] sm:$0xff]  }
 0x1dd   :  { %3805 = vmatprep.subr.bf16.mxu1 %v5580_v62  ;;  %v5638_v57 = vld [vmem:[%s7519_s3 + $0x18] sm:$0xff]   ;;  %v5639_v62 = vld [vmem:[%s7519_s3 + $0x50] sm:$0xff]  }
 0x1df   :  { %3765 = vmatpush1.bf16.msra.mxu0 %v5575_v63  ;;  %v5640_v63 = vld [vmem:[%s7519_s3 + $0x10] sm:$0xff]  }
 0x1e0   :  { %3806 = vmatpush1.bf16.msra.mxu1 %v5578_v16  ;;  %3766 = vmatprep.subr.bf16.mxu0 %v5583_v17  ;;  %v5641_v16 = vld [vmem:[%s7519_s3 + $0x48] sm:$0xff]  }
 0x1e1   :  { %3807 = vmatprep.subr.bf16.mxu1 %v5586_v0  ;;  %v5642_v17 = vld [vmem:[%s7519_s3 + $0x8] sm:$0xff]   ;;  %v5643_v0 = vld [vmem:[%s7519_s3 + $0x40] sm:$0xff]  }
 0x1e3   :  { %3767 = vmatpush2.bf16.msra.mxu0 %v5581_v1  ;;  %v5644_v1 = vld [vmem:[%s7519_s3] sm:$0xff]  }
 0x1e4   :  { %3808 = vmatpush2.bf16.msra.mxu1 %v5584_v3  ;;  %3768 = vmatprep.subr.bf16.mxu0 %v5589_v4  ;;  %v3877_v3 = vmax.f32 %v7239_v6, 0.0  ;;  %v5652_v6 = vld [vmem:[%s7519_s3 + $0xa0] sm:$0xff]  }
 0x1e5   :  { %3809 = vmatprep.subr.bf16.mxu1 %v5592_v5  ;;  %v5649_v5 = vld [vmem:[%s7519_s3 + $0xe8] sm:$0xff]  }
 0x1e6   :  { %v3881_v4 = vpack.c.bf16 %v3877_v3, %v3877_v3 }
 0x1e7   :  { %3769 = vmatpush2.bf16.msra.mxu0 %v5587_v8  ;;  %v5650_v8 = vld [vmem:[%s7519_s3 + $0xa8] sm:$0xff]  }
 0x1e8   :  { %3810 = vmatpush2.bf16.msra.mxu1 %v5590_v24  ;;  %3770 = vmatprep.subr.bf16.mxu0 %v5595_v25  ;;  %v5651_v24 = vld [vmem:[%s7519_s3 + $0xe0] sm:$0xff]   ;;  %v5653_v25 = vld [vmem:[%s7519_s3 + $0xd8] sm:$0xff]  }
 0x1e9   :  { %3811 = vmatprep.subr.bf16.mxu1 %v5598_v11  ;;  %v5654_v11 = vld [vmem:[%s7519_s3 + $0x98] sm:$0xff]  }
 0x1eb   :  { %3771 = vmatpush2.bf16.msra.mxu0 %v5593_v12 }
 0x1ec   :  { %3812 = vmatpush2.bf16.msra.mxu1 %v5596_v13  ;;  %3772 = vmatprep.subr.bf16.mxu0 %v5601_v2 }
 0x1ed   :  { %3813 = vmatprep.subr.bf16.mxu1 %v5604_v46 }
 0x1ef   :  { %3773 = vmatpush2.bf16.msra.mxu0 %v5599_v60 }
 0x1f0   :  { %3814 = vmatpush2.bf16.msra.mxu1 %v5602_v40  ;;  %3774 = vmatprep.subr.bf16.mxu0 %v5607_v14  ;;  %v5655_v40 = vld [vmem:[%s7519_s3 + $0xd0] sm:$0xff]  }
 0x1f1   :  { %3815 = vmatprep.subr.bf16.mxu1 %v5610_v15 }
 0x1f3   :  { %3775 = vmatpush2.bf16.msra.mxu0 %v5605_v51  ;;  %v5656_v51 = vld [vmem:[%s7519_s3 + $0x90] sm:$0xff]  }
 0x1f4   :  { %3816 = vmatpush2.bf16.msra.mxu1 %v5608_v18  ;;  %3776 = vmatprep.subr.bf16.mxu0 %v5613_v61 }
 0x1f5   :  { %3817 = vmatprep.subr.bf16.mxu1 %v5616_v38 }
 0x1f7   :  { %3777 = vmatpush2.bf16.msra.mxu0 %v5611_v39 }
 0x1f8   :  { %3818 = vmatpush2.bf16.msra.mxu1 %v5614_v19  ;;  %3778 = vmatprep.subr.bf16.mxu0 %v5619_v20  ;;  %v5657_v20 = vld [vmem:[%s7519_s3 + $0xc8] sm:$0xff]  }
 0x1f9   :  { %3819 = vmatprep.subr.bf16.mxu1 %v5622_v41  ;;  %v5658_v41 = vld [vmem:[%s7519_s3 + $0x88] sm:$0xff]  }
 0x1fb   :  { %3779 = vmatpush2.bf16.msra.mxu0 %v5617_v21  ;;  %v5659_v21 = vld [vmem:[%s7519_s3 + $0xc0] sm:$0xff]  }
 0x1fc   :  { %3820 = vmatpush2.bf16.msra.mxu1 %v5620_v26  ;;  %3780 = vmatprep.subr.bf16.mxu0 %v5625_v27  ;;  %v5660_v26 = vld [vmem:[%s7519_s3 + $0x80] sm:$0xff]  }
 0x1fd   :  { %3821 = vmatprep.subr.bf16.mxu1 %v5628_v28 }
 0x1ff   :  { %3781 = vmatpush2.bf16.msra.mxu0 %v5623_v29 }
 0x200   :  { %3822 = vmatpush2.bf16.msra.mxu1 %v5626_v30  ;;  %4800 = vmatprep.subr.bf16.mxu0 %v5629_v31 }
 0x201   :  { %4822 = vmatprep.subr.bf16.mxu1 %v5645_v37 }
 0x202   :  { %v3538_v35 = vpop.f32.mrf.mxu0  ;;  %3783 = vmatmul.mubr.bf16.vlgmr.msra.gmra.mxu0 %v6570_v58  ;;  %v5634_v58 = vld [vmem:[%s7519_s3 + $0x28] sm:$0xff]  }
 0x203   :  { %v3579_v43 = vpop.f32.mrf.mxu1  ;;  %3824 = vmatmul.mubr.bf16.vlgmr.msra.gmra.mxu1 %v6574_v59  ;;  %4801 = vmatpush3.bf16.msra.mxu0 %v5630_v33  ;;  %v5635_v59 = vld [vmem:[%s7519_s3 + $0x60] sm:$0xff]  }
 0x204   :  { %v3580_v22 = vadd.f32 %v3579_v43, %v3538_v35  ;;  %4180 = vmatprep.mubr.bf16.mxu0 %v3882_v42  ;;  %v3540_v23 = vpop.f32.mrf.mxu0  ;;  %4802 = vmatprep.subr.bf16.mxu0 %v5631_v34 }
 0x205   :  { %v3581_v44 = vpop.f32.mrf.mxu1  ;;  %4823 = vmatpush3.bf16.msra.mxu1 %v5646_v52 }
 0x206   :  { %v3582_v48 = vadd.f32 %v3581_v44, %v3540_v23  ;;  %v3542_v49 = vpop.f32.mrf.mxu0  ;;  %4824 = vmatprep.subr.bf16.mxu1 %v5647_v53 }
 0x207   :  { %v3583_v50 = vpop.f32.mrf.mxu1  ;;  %4803 = vmatpush3.bf16.msra.mxu0 %v5632_v7 }
 0x208   :  { %v3543_v9 = vpop.f32.mrf.mxu0  ;;  %4804 = vmatprep.subr.bf16.mxu0 %v5633_v45 }
 0x209   :  { %v3584_v36 = vpop.f32.mrf.mxu1  ;;  %4825 = vmatpush3.bf16.msra.mxu1 %v5648_v55 }
 0x20a   :  { %4826 = vmatprep.subr.bf16.mxu1 %v5649_v5 }
 0x20b   :  { %4805 = vmatpush3.bf16.msra.mxu0 %v5634_v58 }
 0x20c   :  { %4806 = vmatprep.subr.bf16.mxu0 %v5635_v59 }
 0x20d   :  { %4827 = vmatpush3.bf16.msra.mxu1 %v5650_v8 }
 0x20e   :  { %4828 = vmatprep.subr.bf16.mxu1 %v5651_v24 }
 0x20f   :  { %4807 = vmatpush3.bf16.msra.mxu0 %v5636_v54 }
 0x210   :  { %4808 = vmatprep.subr.bf16.mxu0 %v5637_v56 }
 0x211   :  { %4829 = vmatpush3.bf16.msra.mxu1 %v5652_v6 }
 0x212   :  { %4830 = vmatprep.subr.bf16.mxu1 %v5653_v25 }
 0x213   :  { %4809 = vmatpush3.bf16.msra.mxu0 %v5638_v57 }
 0x214   :  { %4810 = vmatprep.subr.bf16.mxu0 %v5639_v62 }
 0x215   :  { %4831 = vmatpush3.bf16.msra.mxu1 %v5654_v11 }
 0x216   :  { %4832 = vmatprep.subr.bf16.mxu1 %v5655_v40 }
 0x217   :  { %4811 = vmatpush3.bf16.msra.mxu0 %v5640_v63 }
 0x218   :  { %4812 = vmatprep.subr.bf16.mxu0 %v5641_v16 }
 0x219   :  { %4833 = vmatpush3.bf16.msra.mxu1 %v5656_v51 }
 0x21a   :  { %4834 = vmatprep.subr.bf16.mxu1 %v5657_v20 }
 0x21b   :  { %4813 = vmatpush3.bf16.msra.mxu0 %v5642_v17 }
 0x21c   :  { %4814 = vmatprep.subr.bf16.mxu0 %v5643_v0 }
 0x21d   :  { %4835 = vmatpush3.bf16.msra.mxu1 %v5658_v41 }
 0x21e   :  { %4836 = vmatprep.subr.bf16.mxu1 %v5659_v21 }
 0x21f   :  { %4815 = vmatpush3.bf16.msra.mxu0 %v5644_v1 }
 0x221   :  { %4837 = vmatpush3.bf16.msra.mxu1 %v5660_v26 }
 0x222   :  { %4181 = vmatmul.mubr.bf16.vlgmr.msra.gmra.mxu0 %v3881_v4  ;;  %v4767_v4 = vld [vmem:[%s7522_s4] ss:$0 sm:$0xff] }
 0x242   :  { %v3620_v12 = vpop.f32.mrf.mxu0 }
 0x243   :  { %v3661_v13 = vpop.f32.mrf.mxu1  ;;  %v3621_v2 = vadd.f32 %v3620_v12, %v3580_v22  ;;  %v3859_v22 = vsub.s32 2, %v7184_v10 }
 0x244   :  { %v3622_v46 = vpop.f32.mrf.mxu0 }
 0x245   :  { %v3663_v60 = vpop.f32.mrf.mxu1  ;;  %v3662_v14 = vadd.f32 %v3661_v13, %v3621_v2  ;;  %v3623_v15 = vadd.f32 %v3622_v46, %v3582_v48  ;;  %v3863_v48 = vsub.s32 3, %v7184_v10  ;;  %v3860_v9 = vrot.slane %v7207_v47, %v3859_v22 }
 0x246   :  { %v3624_v18 = vpop.f32.mrf.mxu0 }
 0x247   :  { %v3665_v61 = vpop.f32.mrf.mxu1  ;;  %v3664_v38 = vadd.f32 %v3663_v60, %v3623_v15  ;;  %v3864_v53 = vrot.slane %v7207_v47, %v3863_v48 }
 0x248   :  { %v3625_v39 = vpop.f32.mrf.mxu0 }
 0x249   :  { %v3666_v19 = vpop.f32.mrf.mxu1 }
 0x282   :  { %v3702_v27 = vpop.f32.mrf.mxu0 }
 0x283   :  { %v3743_v28 = vpop.f32.mrf.mxu1  ;;  %v3703_v42 = vadd.f32 %v3702_v27, %v3662_v14 }
 0x284   :  { %v3704_v29 = vpop.f32.mrf.mxu0 }
 0x285   :  { %v3745_v30 = vpop.f32.mrf.mxu1  ;;  %v3705_v35 = vadd.f32 %v3704_v29, %v3664_v38  ;;  %v3744_v43 = vadd.f32 %v3743_v28, %v3703_v42 }
 0x286   :  { %v3706_v31 = vpop.f32.mrf.mxu0 }
 0x287   :  { %v3747_v32 = vpop.f32.mrf.mxu1  ;;  %v3746_v44 = vadd.f32 %v3745_v30, %v3705_v35 }
 0x288   :  { %v3707_v33 = vpop.f32.mrf.mxu0 }
 0x289   :  { %v3748_v34 = vpop.f32.mrf.mxu1 }
 0x2c2   :  { %v3784_v7 = vpop.f32.mrf.mxu0 }
 0x2c3   :  { %v3825_v23 = vpop.f32.mrf.mxu1  ;;  %v3785_v45 = vadd.f32 %v3784_v7, %v3744_v43 }
 0x2c4   :  { %v3786_v49 = vpop.f32.mrf.mxu0 }
 0x2c5   :  { %v3827_v50 = vpop.f32.mrf.mxu1  ;;  %v3826_v58 = vadd.f32 %v3825_v23, %v3785_v45  ;;  %v3787_v59 = vadd.f32 %v3786_v49, %v3746_v44 }
 0x2c6   :  { %v3788_v36 = vpop.f32.mrf.mxu0 }
 0x2c7   :  { %v3829_v37 = vpop.f32.mrf.mxu1  ;;  %v3828_v52 = vadd.f32 %v3827_v50, %v3787_v59  ;;  %v3871_v56 = vadd.f32 %v3860_v9, %v3826_v58 }
 0x2c8   :  { %v3789_v54 = vpop.f32.mrf.mxu0 }
 0x2c9   :  { %v3830_v55 = vpop.f32.mrf.mxu1  ;;  %v3872_v57 = vadd.f32 %v3864_v53, %v3828_v52  ;;  %3875 = vst [vmem:[%s7521_s6 + $0x10] sm:$0xff] %v3871_v56  ;;  %v3879_v10 = vmax.f32 %v3871_v56, 0.0 }
 0x2cb   :  { %3876 = vst [vmem:[%s7521_s6 + $0x18] sm:$0xff] %v3872_v57  ;;  %v3880_v62 = vmax.f32 %v3872_v57, 0.0  ;;  %v3883_v16 = vpack.c.bf16 %v3879_v10, %v3879_v10 }
 0x2cd   :  { %v3884_v63 = vpack.c.bf16 %v3880_v62, %v3880_v62 }
 0x2cf   :  { %4220 = vmatprep.mubr.bf16.mxu1 %v3884_v63 }
 0x2d0   :  { %4221 = vmatmul.mubr.bf16.vlgmr.msra.gmra.mxu1 %v3883_v16 }
 0x2e2   :  { %v4816_v17 = vpop.f32.mrf.mxu0 }
 0x2e4   :  { %v4817_v47 = vpop.f32.mrf.mxu0 }
 0x2e5   :  { %v4818_v0 = vadd.f32 %v4817_v47, %v4816_v17 }
 0x2e6   :  { %v4819_v1 = vpop.f32.mrf.mxu0 }
 0x2e7   :  { %v4183_v24 = vadd.f32 %v4818_v0, %v4767_v4 }
 0x2e8   :  { %v4820_v3 = vpop.f32.mrf.mxu0 }
 0x390   :  { %v4838_v5 = vpop.f32.mrf.mxu1 }
 0x392   :  { %v4839_v8 = vpop.f32.mrf.mxu1 }
 0x393   :  { %v4840_v6 = vadd.f32 %v4839_v8, %v4838_v5 }
 0x394   :  { %v4841_v25 = vpop.f32.mrf.mxu1 }
 0x395   :  { %v4223_v11 = vadd.f32 %v4840_v6, %v4183_v24 }
 0x396   :  { %v4842_v12 = vpop.f32.mrf.mxu1 }
 0x397   :  { %4228 = vst [vmem:[%s7523_s5] sm:$0xff] %v4223_v11 }

</bundles_post_ra>
